<compile_context>
chip_gen: v6e
topology: v6e:2x2x1
jax: 0.10.0
libtpu: 0.0.40
codegen_flags: <defaults>
</compile_context>

<pallas_src>
import functools

import jax
import jax.numpy as jnp
import numpy as np
from jax.experimental import pallas as pl
from jax.experimental.pallas import tpu as pltpu


# --------------------------- module-spec helper -------------------------------

def get_conv_mp_out_size(in_size, last_layer, mps):
    size = in_size
    for mp in mps:
        size = round((size - mp['kernel_size']) / mp['stride'] + 1)
    size = size + 1 if size % 2 != 0 else size
    return int(size * last_layer['out_channels'])


# --------------------------- in-kernel building blocks -------------------------

def _shift_lanes(v, s):
    """out[..., l] = v[..., l - s] with zero fill; s is a static Python int."""
    if s == 0:
        return v
    c, l = v.shape
    fill = jnp.zeros((c, abs(s)), v.dtype)
    if s > 0:
        return jnp.concatenate([fill, v[:, :l - s]], axis=1)
    return jnp.concatenate([v[:, -s:], fill], axis=1)


def _conv1d_same_dilated(x_cl, w_koc, b_col, ksize, pad, dil, relu):
    """'same' 1D conv, channels on sublanes / length on lanes.

    x_cl:  (Cin, L) activations; valid samples sit on lanes l % dil == 0.
    w_koc: (K, Cout, Cin) weights; b_col: (Cout, 1) bias.
    Returns (Cout, L); valid output samples stay on lanes l % dil == 0.
    """
    cin, l = x_cl.shape
    cout = w_koc.shape[1]
    acc = jnp.broadcast_to(b_col, (cout, l))
    for k in range(ksize):                      # K is tiny & static -> fully unrolled
        tap = _shift_lanes(x_cl, (pad - k) * dil)          # (Cin, L)
        w_k = w_koc[k]                                     # (Cout, Cin)
        for ci in range(cin):
            # (Cout, 1) * (1, L) broadcast FMA on the VPU (exact f32).
            acc = acc + w_k[:, ci:ci + 1] * tap[ci:ci + 1, :]
    if relu:
        acc = jnp.maximum(acc, 0.0)
    return acc


def _maxpool2_dilated(v, dil):
    """MaxPool1d(kernel=2, stride=2) on dilated-lane data.

    Valid input samples on lanes l % dil == 0; valid outputs land on lanes
    l % (2*dil) == 0 (other lanes hold finite don't-care values).
    """
    return jnp.maximum(v, _shift_lanes(v, -dil))


def _masked_sum(feat, w):
    """sum(feat * w) -> (1, 1); w is zero on don't-care lanes."""
    prod = feat * w
    return jnp.sum(jnp.sum(prod, axis=1, keepdims=True), axis=0, keepdims=True)


# --------------------------- the single fused kernel ---------------------------

def _conv_forward_kernel(h_ref, x_ref, w1_ref, b1_ref, w2_ref, b2_ref,
                         fw1_ref, fw2_ref, bfc1_ref, bfc2_ref,
                         res_ref, logit_ref, z_ref, y_ref, *, k1, p1, k2, p2):
    h = h_ref[0]                                      # (Cin, Ly)
    xz = jnp.concatenate([h, x_ref[0]], axis=1)       # (Cin, Lz) == torch.cat(dim=1)
    w1 = w1_ref[...]
    b1 = b1_ref[...]
    w2 = w2_ref[...]
    b2 = b2_ref[...]

    def branch(inp):
        a = _conv1d_same_dilated(inp, w1, b1, k1, p1, 1, relu=True)
        a = _maxpool2_dilated(a, 1)                   # valid samples every 2 lanes
        a = _conv1d_same_dilated(a, w2, b2, k2, p2, 2, relu=False)
        a = _maxpool2_dilated(a, 2)                   # valid samples every 4 lanes
        return a

    z = branch(xz)                                    # (Cout2, Lz)
    y = branch(h)                                     # (Cout2, Ly)

    # fc1(Z.flatten()) / fc2(Y.flatten()) as masked multiply + reduce (fc weights
    # were scattered onto the dilated lane grid on the host, zeros elsewhere).
    r1 = _masked_sum(z, fw1_ref[...]) + bfc1_ref[...]    # (1, 1)
    r2 = _masked_sum(y, fw2_ref[...]) + bfc2_ref[...]    # (1, 1)
    logit = r1 * r2

    # nn.Dropout(p=0.2) is identity in eval mode; softmax over a length-1 axis is
    # exactly 1.0, so the exp/sum would be dead work.
    # TODO(synk): training-mode dropout RNG is not implemented (inference kernel).
    logit_ref[0] = logit
    res_ref[0] = jnp.ones((1, 1), res_ref.dtype)
    z_ref[0] = z
    y_ref[0] = y


# --------------------------- module port ---------------------------------------

class ConvPallas:
    """JAX/Pallas port of models.layers.Conv (forward pass, eval mode)."""

    def __init__(self, conv1d_1, conv1d_2, maxpool1d_1, maxpool1d_2,
                 fc_1_size, fc_2_size, key):
        assert maxpool1d_1 == {'kernel_size': 2, 'stride': 2}
        assert maxpool1d_2 == {'kernel_size': 2, 'stride': 2}
        self.c1 = dict(conv1d_1)
        self.c2 = dict(conv1d_2)
        assert self.c2['in_channels'] == self.c1['out_channels']
        k1, p1 = self.c1['kernel_size'], self.c1.get('padding', 0)
        k2, p2 = self.c2['kernel_size'], self.c2.get('padding', 0)
        # The fused kernel implements 'same' convolutions (length-preserving).
        # TODO(synk): non-'same' padding / other pool configs not implemented.
        assert 2 * p1 == k1 - 1 and 2 * p2 == k2 - 1, "only 'same' convs supported"

        self.lz = int(fc_1_size)              # concat length   (hidden + x feats)
        self.ly = int(fc_2_size)              # hidden length
        assert self.lz % 4 == 0 and self.ly % 4 == 0
        c1o = self.c1['out_channels']
        c2o = self.c2['out_channels']
        fc1_in = get_conv_mp_out_size(fc_1_size, conv1d_2, [maxpool1d_1, maxpool1d_2])
        fc2_in = get_conv_mp_out_size(fc_2_size, conv1d_2, [maxpool1d_1, maxpool1d_2])
        assert fc1_in == c2o * (self.lz // 4)
        assert fc2_in == c2o * (self.ly // 4)

        ks = jax.random.split(key, 8)

        def init(k, shape, scale=0.1):
            return scale * jax.random.normal(k, shape, jnp.float32)

        # torch-layout parameters.
        self.w1_oik = init(ks[0], (c1o, self.c1['in_channels'], k1))
        self.b1 = init(ks[1], (c1o,))
        self.w2_oik = init(ks[2], (c2o, self.c2['in_channels'], k2))
        self.b2 = init(ks[3], (c2o,))
        self.fc1_w = init(ks[4], (1, fc1_in))
        self.fc1_b = init(ks[5], (1,))
        self.fc2_w = init(ks[6], (1, fc2_in))
        self.fc2_b = init(ks[7], (1,))

        # kernel-layout copies (prepared once at init, no per-call glue).
        self.w1_koc = jnp.transpose(self.w1_oik, (2, 0, 1))   # (K, Cout, Cin)
        self.w2_koc = jnp.transpose(self.w2_oik, (2, 0, 1))
        self.b1_col = self.b1.reshape(-1, 1)
        self.b2_col = self.b2.reshape(-1, 1)
        # fc weights scattered onto the dilated lane grid (valid lanes every 4).
        fw1 = jnp.zeros((c2o, self.lz), jnp.float32)
        self.fw1_dil = fw1.at[:, ::4].set(self.fc1_w.reshape(c2o, self.lz // 4))
        fw2 = jnp.zeros((c2o, self.ly), jnp.float32)
        self.fw2_dil = fw2.at[:, ::4].set(self.fc2_w.reshape(c2o, self.ly // 4))
        self.bfc1 = self.fc1_b.reshape(1, 1)
        self.bfc2 = self.fc2_b.reshape(1, 1)

    def __call__(self, hidden, x):
        n, hf = hidden.shape
        xf = x.shape[1]
        cin = self.c1['in_channels']
        assert hf == self.ly and hf + xf == self.lz
        assert n % cin == 0
        bp = n // cin
        # Leading-dim regrouping only (matches torch .view(-1, Cin, L)); cheap.
        hidden_r = hidden.reshape(bp, cin, hf)
        x_r = x.reshape(bp, cin, xf)

        c1o = self.c1['out_channels']
        c2o = self.c2['out_channels']
        k1, p1 = self.c1['kernel_size'], self.c1.get('padding', 0)
        k2, p2 = self.c2['kernel_size'], self.c2.get('padding', 0)

        kernel = functools.partial(_conv_forward_kernel, k1=k1, p1=p1, k2=k2, p2=p2)

        def full(shape):
            return pl.BlockSpec(shape, lambda b, _s=shape: (0,) * len(_s))

        res, logit, z_dil, y_dil = pl.pallas_call(
            kernel,
            grid=(bp,),
            in_specs=[
                pl.BlockSpec((1, cin, hf), lambda b: (b, 0, 0)),
                pl.BlockSpec((1, cin, xf), lambda b: (b, 0, 0)),
                full((k1, c1o, cin)),
                full((c1o, 1)),
                full((k2, c2o, c1o)),
                full((c2o, 1)),
                full((c2o, self.lz)),
                full((c2o, self.ly)),
                full((1, 1)),
                full((1, 1)),
            ],
            out_specs=[
                pl.BlockSpec((1, 1, 1), lambda b: (b, 0, 0)),
                pl.BlockSpec((1, 1, 1), lambda b: (b, 0, 0)),
                pl.BlockSpec((1, c2o, self.lz), lambda b: (b, 0, 0)),
                pl.BlockSpec((1, c2o, self.ly), lambda b: (b, 0, 0)),
            ],
            out_shape=(
                jax.ShapeDtypeStruct((bp, 1, 1), jnp.float32),      # softmax result
                jax.ShapeDtypeStruct((bp, 1, 1), jnp.float32),      # fc1*fc2 (debug)
                jax.ShapeDtypeStruct((bp, c2o, self.lz), jnp.float32),  # Z (dilated)
                jax.ShapeDtypeStruct((bp, c2o, self.ly), jnp.float32),  # Y (dilated)
            ),
            compiler_params=pltpu.CompilerParams(
                dimension_semantics=("parallel",)),
        )(hidden_r, x_r, self.w1_koc, self.b1_col, self.w2_koc, self.b2_col,
          self.fw1_dil, self.fw2_dil, self.bfc1, self.bfc2)

        res = res.reshape(bp, 1)
        logits = logit.reshape(bp, 1)
        # Debug/verification outputs: compact the dilated lane grid (valid every 4
        # lanes) and flatten exactly like torch's Z.view(-1, C*L).
        z_flat = z_dil[:, :, ::4].reshape(bp, -1)
        y_flat = y_dil[:, :, ::4].reshape(bp, -1)
        return res, logits, z_flat, y_flat


# --------------------------- pure-JAX reference --------------------------------

def _ref_forward(model, hidden, x):
    prec = jax.lax.Precision.HIGHEST

    def conv(xs_ncl, w_oik, bias, pad):
        out = jax.lax.conv_general_dilated(
            xs_ncl, w_oik, window_strides=(1,), padding=[(pad, pad)],
            dimension_numbers=('NCH', 'OIH', 'NCH'), precision=prec)
        return out + bias[None, :, None]

    def mp2(v):
        b, c, l = v.shape
        lo = (l - 2) // 2 + 1
        return jnp.max(v[:, :, :2 * lo].reshape(b, c, lo, 2), axis=-1)

    cin = model.c1['in_channels']
    concat = jnp.concatenate([hidden, x], axis=1)
    concat = concat.reshape(-1, cin, hidden.shape[1] + x.shape[1])
    z = mp2(jax.nn.relu(conv(concat, model.w1_oik, model.b1, model.c1.get('padding', 0))))
    z = mp2(conv(z, model.w2_oik, model.b2, model.c2.get('padding', 0)))
    h = hidden.reshape(-1, cin, hidden.shape[1])
    y = mp2(jax.nn.relu(conv(h, model.w1_oik, model.b1, model.c1.get('padding', 0))))
    y = mp2(conv(y, model.w2_oik, model.b2, model.c2.get('padding', 0)))
    zf = z.reshape(z.shape[0], -1)
    yf = y.reshape(y.shape[0], -1)
    r1 = jnp.matmul(zf, model.fc1_w.T, precision=prec) + model.fc1_b
    r2 = jnp.matmul(yf, model.fc2_w.T, precision=prec) + model.fc2_b
    logits = r1 * r2
    return jax.nn.softmax(logits, axis=1), logits, zf, yf


# --------------------------- main -----------------------------------------------

if __name__ == "__main__":
    conv1d_1 = {'in_channels': 2, 'out_channels': 4, 'kernel_size': 3, 'padding': 1}
    conv1d_2 = {'in_channels': 4, 'out_channels': 8, 'kernel_size': 3, 'padding': 1}
    maxpool1d_1 = {'kernel_size': 2, 'stride': 2}
    maxpool1d_2 = {'kernel_size': 2, 'stride': 2}
    hidden_feat, x_feat, n_nodes = 64, 64, 4
    fc_1_size = hidden_feat + x_feat
    fc_2_size = hidden_feat

    key = jax.random.PRNGKey(0)
    k_param, k_h, k_x = jax.random.split(key, 3)
    model = ConvPallas(conv1d_1, conv1d_2, maxpool1d_1, maxpool1d_2,
                       fc_1_size, fc_2_size, k_param)

    hidden = jax.random.normal(k_h, (n_nodes, hidden_feat), jnp.float32)
    x = jax.random.normal(k_x, (n_nodes, x_feat), jnp.float32)

    res, logits, zf, yf = model(hidden, x)
    jax.block_until_ready((res, logits, zf, yf))

    res_ref, logits_ref, zf_ref, yf_ref = _ref_forward(model, hidden, x)
    assert res.shape == (n_nodes // conv1d_1['in_channels'], 1)
    np.testing.assert_allclose(np.asarray(zf), np.asarray(zf_ref), rtol=1e-4, atol=1e-5)
    np.testing.assert_allclose(np.asarray(yf), np.asarray(yf_ref), rtol=1e-4, atol=1e-5)
    np.testing.assert_allclose(np.asarray(logits), np.asarray(logits_ref),
                               rtol=1e-4, atol=1e-5)
    np.testing.assert_allclose(np.asarray(res), np.asarray(res_ref),
                               rtol=1e-6, atol=1e-6)
    print("KERNEL_OK")
</pallas_src>

<mosaic_0001>
module attributes {stable_mosaic.version = 11 : i64} {
  func.func @_conv_forward_kernel(%arg0: i32, %arg1: memref<1x2x64xf32, #tpu.memory_space<vmem>>, %arg2: memref<1x2x64xf32, #tpu.memory_space<vmem>>, %arg3: memref<3x4x2xf32, #tpu.memory_space<vmem>>, %arg4: memref<4x1xf32, #tpu.memory_space<vmem>>, %arg5: memref<3x8x4xf32, #tpu.memory_space<vmem>>, %arg6: memref<8x1xf32, #tpu.memory_space<vmem>>, %arg7: memref<8x128xf32, #tpu.memory_space<vmem>>, %arg8: memref<8x64xf32, #tpu.memory_space<vmem>>, %arg9: memref<1x1xf32, #tpu.memory_space<vmem>>, %arg10: memref<1x1xf32, #tpu.memory_space<vmem>>, %arg11: memref<1x1x1xf32, #tpu.memory_space<vmem>>, %arg12: memref<1x1x1xf32, #tpu.memory_space<vmem>>, %arg13: memref<1x8x128xf32, #tpu.memory_space<vmem>>, %arg14: memref<1x8x64xf32, #tpu.memory_space<vmem>>) attributes {dimension_semantics = [#tpu.dimension_semantics<parallel>], iteration_bounds = array<i64: 2>, scalar_prefetch = 0 : i64, scratch_operands = 0 : i64, tpu.core_type = #tpu.core_type<tc>, window_params = [{transform_indices = @transform_0, window_bounds = array<i64: 1, 2, 64>}, {transform_indices = @transform_1, window_bounds = array<i64: 1, 2, 64>}, {pipeline_mode = #tpu.pipeline_mode<synchronous>, transform_indices = @transform_2, window_bounds = array<i64: 3, 4, 2>}, {pipeline_mode = #tpu.pipeline_mode<synchronous>, transform_indices = @transform_3, window_bounds = array<i64: 4, 1>}, {pipeline_mode = #tpu.pipeline_mode<synchronous>, transform_indices = @transform_4, window_bounds = array<i64: 3, 8, 4>}, {pipeline_mode = #tpu.pipeline_mode<synchronous>, transform_indices = @transform_5, window_bounds = array<i64: 8, 1>}, {pipeline_mode = #tpu.pipeline_mode<synchronous>, transform_indices = @transform_6, window_bounds = array<i64: 8, 128>}, {pipeline_mode = #tpu.pipeline_mode<synchronous>, transform_indices = @transform_7, window_bounds = array<i64: 8, 64>}, {pipeline_mode = #tpu.pipeline_mode<synchronous>, transform_indices = @transform_8, window_bounds = array<i64: 1, 1>}, {pipeline_mode = #tpu.pipeline_mode<synchronous>, transform_indices = @transform_9, window_bounds = array<i64: 1, 1>}, {transform_indices = @transform_10, window_bounds = array<i64: 1, 1, 1>}, {transform_indices = @transform_11, window_bounds = array<i64: 1, 1, 1>}, {transform_indices = @transform_12, window_bounds = array<i64: 1, 8, 128>}, {transform_indices = @transform_13, window_bounds = array<i64: 1, 8, 64>}]} {
    %c0 = arith.constant 0 : index
    %c0_0 = arith.constant 0 : index
    %c0_1 = arith.constant 0 : index
    %0 = vector.load %arg1[%c0, %c0_0, %c0_1] : memref<1x2x64xf32, #tpu.memory_space<vmem>>, vector<1x2x64xf32>
    %1 = vector.shape_cast %0 : vector<1x2x64xf32> to vector<2x64xf32>
    %c0_2 = arith.constant 0 : index
    %c0_3 = arith.constant 0 : index
    %c0_4 = arith.constant 0 : index
    %2 = vector.load %arg2[%c0_2, %c0_3, %c0_4] : memref<1x2x64xf32, #tpu.memory_space<vmem>>, vector<1x2x64xf32>
    %3 = vector.shape_cast %2 : vector<1x2x64xf32> to vector<2x64xf32>
    %4 = tpu.concatenate %1, %3 in 1 : vector<2x64xf32>, vector<2x64xf32> -> vector<2x128xf32>
    %c0_5 = arith.constant 0 : index
    %c0_6 = arith.constant 0 : index
    %c0_7 = arith.constant 0 : index
    %5 = vector.load %arg3[%c0_5, %c0_6, %c0_7] : memref<3x4x2xf32, #tpu.memory_space<vmem>>, vector<3x4x2xf32>
    %c0_8 = arith.constant 0 : index
    %c0_9 = arith.constant 0 : index
    %6 = vector.load %arg4[%c0_8, %c0_9] : memref<4x1xf32, #tpu.memory_space<vmem>>, vector<4x1xf32>
    %c0_10 = arith.constant 0 : index
    %c0_11 = arith.constant 0 : index
    %c0_12 = arith.constant 0 : index
    %7 = vector.load %arg5[%c0_10, %c0_11, %c0_12] : memref<3x8x4xf32, #tpu.memory_space<vmem>>, vector<3x8x4xf32>
    %c0_13 = arith.constant 0 : index
    %c0_14 = arith.constant 0 : index
    %8 = vector.load %arg6[%c0_13, %c0_14] : memref<8x1xf32, #tpu.memory_space<vmem>>, vector<8x1xf32>
    %9 = vector.shape_cast %6 : vector<4x1xf32> to vector<4x1xf32>
    %10 = vector.broadcast %9 : vector<4x1xf32> to vector<4x128xf32>
    %cst = arith.constant 0.000000e+00 : f32
    %11 = vector.broadcast %cst : f32 to vector<2x1xf32>
    %12 = vector.extract_strided_slice %4 {offsets = [0, 0], sizes = [2, 127], strides = [1, 1]} : vector<2x128xf32> to vector<2x127xf32>
    %13 = tpu.concatenate %11, %12 in 1 : vector<2x1xf32>, vector<2x127xf32> -> vector<2x128xf32>
    %14 = vector.extract_strided_slice %5 {offsets = [0, 0, 0], sizes = [1, 4, 2], strides = [1, 1, 1]} : vector<3x4x2xf32> to vector<1x4x2xf32>
    %15 = vector.shape_cast %14 : vector<1x4x2xf32> to vector<4x2xf32>
    %16 = vector.extract_strided_slice %15 {offsets = [0, 0], sizes = [4, 1], strides = [1, 1]} : vector<4x2xf32> to vector<4x1xf32>
    %17 = vector.extract_strided_slice %13 {offsets = [0, 0], sizes = [1, 128], strides = [1, 1]} : vector<2x128xf32> to vector<1x128xf32>
    %18 = vector.broadcast %16 : vector<4x1xf32> to vector<4x128xf32>
    %19 = vector.broadcast %17 : vector<1x128xf32> to vector<4x128xf32>
    %20 = arith.mulf %18, %19 : vector<4x128xf32>
    %21 = arith.addf %10, %20 : vector<4x128xf32>
    %22 = vector.extract_strided_slice %15 {offsets = [0, 1], sizes = [4, 1], strides = [1, 1]} : vector<4x2xf32> to vector<4x1xf32>
    %23 = vector.extract_strided_slice %13 {offsets = [1, 0], sizes = [1, 128], strides = [1, 1]} : vector<2x128xf32> to vector<1x128xf32>
    %24 = vector.broadcast %22 : vector<4x1xf32> to vector<4x128xf32>
    %25 = vector.broadcast %23 : vector<1x128xf32> to vector<4x128xf32>
    %26 = arith.mulf %24, %25 : vector<4x128xf32>
    %27 = arith.addf %21, %26 : vector<4x128xf32>
    %28 = vector.extract_strided_slice %5 {offsets = [1, 0, 0], sizes = [1, 4, 2], strides = [1, 1, 1]} : vector<3x4x2xf32> to vector<1x4x2xf32>
    %29 = vector.shape_cast %28 : vector<1x4x2xf32> to vector<4x2xf32>
    %30 = vector.extract_strided_slice %29 {offsets = [0, 0], sizes = [4, 1], strides = [1, 1]} : vector<4x2xf32> to vector<4x1xf32>
    %31 = vector.extract_strided_slice %4 {offsets = [0, 0], sizes = [1, 128], strides = [1, 1]} : vector<2x128xf32> to vector<1x128xf32>
    %32 = vector.broadcast %30 : vector<4x1xf32> to vector<4x128xf32>
    %33 = vector.broadcast %31 : vector<1x128xf32> to vector<4x128xf32>
    %34 = arith.mulf %32, %33 : vector<4x128xf32>
    %35 = arith.addf %27, %34 : vector<4x128xf32>
    %36 = vector.extract_strided_slice %29 {offsets = [0, 1], sizes = [4, 1], strides = [1, 1]} : vector<4x2xf32> to vector<4x1xf32>
    %37 = vector.extract_strided_slice %4 {offsets = [1, 0], sizes = [1, 128], strides = [1, 1]} : vector<2x128xf32> to vector<1x128xf32>
    %38 = vector.broadcast %36 : vector<4x1xf32> to vector<4x128xf32>
    %39 = vector.broadcast %37 : vector<1x128xf32> to vector<4x128xf32>
    %40 = arith.mulf %38, %39 : vector<4x128xf32>
    %41 = arith.addf %35, %40 : vector<4x128xf32>
    %cst_15 = arith.constant 0.000000e+00 : f32
    %42 = vector.broadcast %cst_15 : f32 to vector<2x1xf32>
    %43 = vector.extract_strided_slice %4 {offsets = [0, 1], sizes = [2, 127], strides = [1, 1]} : vector<2x128xf32> to vector<2x127xf32>
    %44 = tpu.concatenate %43, %42 in 1 : vector<2x127xf32>, vector<2x1xf32> -> vector<2x128xf32>
    %45 = vector.extract_strided_slice %5 {offsets = [2, 0, 0], sizes = [1, 4, 2], strides = [1, 1, 1]} : vector<3x4x2xf32> to vector<1x4x2xf32>
    %46 = vector.shape_cast %45 : vector<1x4x2xf32> to vector<4x2xf32>
    %47 = vector.extract_strided_slice %46 {offsets = [0, 0], sizes = [4, 1], strides = [1, 1]} : vector<4x2xf32> to vector<4x1xf32>
    %48 = vector.extract_strided_slice %44 {offsets = [0, 0], sizes = [1, 128], strides = [1, 1]} : vector<2x128xf32> to vector<1x128xf32>
    %49 = vector.broadcast %47 : vector<4x1xf32> to vector<4x128xf32>
    %50 = vector.broadcast %48 : vector<1x128xf32> to vector<4x128xf32>
    %51 = arith.mulf %49, %50 : vector<4x128xf32>
    %52 = arith.addf %41, %51 : vector<4x128xf32>
    %53 = vector.extract_strided_slice %46 {offsets = [0, 1], sizes = [4, 1], strides = [1, 1]} : vector<4x2xf32> to vector<4x1xf32>
    %54 = vector.extract_strided_slice %44 {offsets = [1, 0], sizes = [1, 128], strides = [1, 1]} : vector<2x128xf32> to vector<1x128xf32>
    %55 = vector.broadcast %53 : vector<4x1xf32> to vector<4x128xf32>
    %56 = vector.broadcast %54 : vector<1x128xf32> to vector<4x128xf32>
    %57 = arith.mulf %55, %56 : vector<4x128xf32>
    %58 = arith.addf %52, %57 : vector<4x128xf32>
    %cst_16 = arith.constant 0.000000e+00 : f32
    %59 = vector.broadcast %cst_16 : f32 to vector<4x128xf32>
    %60 = arith.maximumf %58, %59 : vector<4x128xf32>
    %cst_17 = arith.constant 0.000000e+00 : f32
    %61 = vector.broadcast %cst_17 : f32 to vector<4x1xf32>
    %62 = vector.extract_strided_slice %60 {offsets = [0, 1], sizes = [4, 127], strides = [1, 1]} : vector<4x128xf32> to vector<4x127xf32>
    %63 = tpu.concatenate %62, %61 in 1 : vector<4x127xf32>, vector<4x1xf32> -> vector<4x128xf32>
    %64 = arith.maximumf %60, %63 : vector<4x128xf32>
    %65 = vector.shape_cast %8 : vector<8x1xf32> to vector<8x1xf32>
    %66 = vector.broadcast %65 : vector<8x1xf32> to vector<8x128xf32>
    %cst_18 = arith.constant 0.000000e+00 : f32
    %67 = vector.broadcast %cst_18 : f32 to vector<4x2xf32>
    %68 = vector.extract_strided_slice %64 {offsets = [0, 0], sizes = [4, 126], strides = [1, 1]} : vector<4x128xf32> to vector<4x126xf32>
    %69 = tpu.concatenate %67, %68 in 1 : vector<4x2xf32>, vector<4x126xf32> -> vector<4x128xf32>
    %70 = vector.extract_strided_slice %7 {offsets = [0, 0, 0], sizes = [1, 8, 4], strides = [1, 1, 1]} : vector<3x8x4xf32> to vector<1x8x4xf32>
    %71 = vector.shape_cast %70 : vector<1x8x4xf32> to vector<8x4xf32>
    %72 = vector.extract_strided_slice %71 {offsets = [0, 0], sizes = [8, 1], strides = [1, 1]} : vector<8x4xf32> to vector<8x1xf32>
    %73 = vector.extract_strided_slice %69 {offsets = [0, 0], sizes = [1, 128], strides = [1, 1]} : vector<4x128xf32> to vector<1x128xf32>
    %74 = vector.broadcast %72 : vector<8x1xf32> to vector<8x128xf32>
    %75 = vector.broadcast %73 : vector<1x128xf32> to vector<8x128xf32>
    %76 = arith.mulf %74, %75 : vector<8x128xf32>
    %77 = arith.addf %66, %76 : vector<8x128xf32>
    %78 = vector.extract_strided_slice %71 {offsets = [0, 1], sizes = [8, 1], strides = [1, 1]} : vector<8x4xf32> to vector<8x1xf32>
    %79 = vector.extract_strided_slice %69 {offsets = [1, 0], sizes = [1, 128], strides = [1, 1]} : vector<4x128xf32> to vector<1x128xf32>
    %80 = vector.broadcast %78 : vector<8x1xf32> to vector<8x128xf32>
    %81 = vector.broadcast %79 : vector<1x128xf32> to vector<8x128xf32>
    %82 = arith.mulf %80, %81 : vector<8x128xf32>
    %83 = arith.addf %77, %82 : vector<8x128xf32>
    %84 = vector.extract_strided_slice %71 {offsets = [0, 2], sizes = [8, 1], strides = [1, 1]} : vector<8x4xf32> to vector<8x1xf32>
    %85 = vector.extract_strided_slice %69 {offsets = [2, 0], sizes = [1, 128], strides = [1, 1]} : vector<4x128xf32> to vector<1x128xf32>
    %86 = vector.broadcast %84 : vector<8x1xf32> to vector<8x128xf32>
    %87 = vector.broadcast %85 : vector<1x128xf32> to vector<8x128xf32>
    %88 = arith.mulf %86, %87 : vector<8x128xf32>
    %89 = arith.addf %83, %88 : vector<8x128xf32>
    %90 = vector.extract_strided_slice %71 {offsets = [0, 3], sizes = [8, 1], strides = [1, 1]} : vector<8x4xf32> to vector<8x1xf32>
    %91 = vector.extract_strided_slice %69 {offsets = [3, 0], sizes = [1, 128], strides = [1, 1]} : vector<4x128xf32> to vector<1x128xf32>
    %92 = vector.broadcast %90 : vector<8x1xf32> to vector<8x128xf32>
    %93 = vector.broadcast %91 : vector<1x128xf32> to vector<8x128xf32>
    %94 = arith.mulf %92, %93 : vector<8x128xf32>
    %95 = arith.addf %89, %94 : vector<8x128xf32>
    %96 = vector.extract_strided_slice %7 {offsets = [1, 0, 0], sizes = [1, 8, 4], strides = [1, 1, 1]} : vector<3x8x4xf32> to vector<1x8x4xf32>
    %97 = vector.shape_cast %96 : vector<1x8x4xf32> to vector<8x4xf32>
    %98 = vector.extract_strided_slice %97 {offsets = [0, 0], sizes = [8, 1], strides = [1, 1]} : vector<8x4xf32> to vector<8x1xf32>
    %99 = vector.extract_strided_slice %64 {offsets = [0, 0], sizes = [1, 128], strides = [1, 1]} : vector<4x128xf32> to vector<1x128xf32>
    %100 = vector.broadcast %98 : vector<8x1xf32> to vector<8x128xf32>
    %101 = vector.broadcast %99 : vector<1x128xf32> to vector<8x128xf32>
    %102 = arith.mulf %100, %101 : vector<8x128xf32>
    %103 = arith.addf %95, %102 : vector<8x128xf32>
    %104 = vector.extract_strided_slice %97 {offsets = [0, 1], sizes = [8, 1], strides = [1, 1]} : vector<8x4xf32> to vector<8x1xf32>
    %105 = vector.extract_strided_slice %64 {offsets = [1, 0], sizes = [1, 128], strides = [1, 1]} : vector<4x128xf32> to vector<1x128xf32>
    %106 = vector.broadcast %104 : vector<8x1xf32> to vector<8x128xf32>
    %107 = vector.broadcast %105 : vector<1x128xf32> to vector<8x128xf32>
    %108 = arith.mulf %106, %107 : vector<8x128xf32>
    %109 = arith.addf %103, %108 : vector<8x128xf32>
    %110 = vector.extract_strided_slice %97 {offsets = [0, 2], sizes = [8, 1], strides = [1, 1]} : vector<8x4xf32> to vector<8x1xf32>
    %111 = vector.extract_strided_slice %64 {offsets = [2, 0], sizes = [1, 128], strides = [1, 1]} : vector<4x128xf32> to vector<1x128xf32>
    %112 = vector.broadcast %110 : vector<8x1xf32> to vector<8x128xf32>
    %113 = vector.broadcast %111 : vector<1x128xf32> to vector<8x128xf32>
    %114 = arith.mulf %112, %113 : vector<8x128xf32>
    %115 = arith.addf %109, %114 : vector<8x128xf32>
    %116 = vector.extract_strided_slice %97 {offsets = [0, 3], sizes = [8, 1], strides = [1, 1]} : vector<8x4xf32> to vector<8x1xf32>
    %117 = vector.extract_strided_slice %64 {offsets = [3, 0], sizes = [1, 128], strides = [1, 1]} : vector<4x128xf32> to vector<1x128xf32>
    %118 = vector.broadcast %116 : vector<8x1xf32> to vector<8x128xf32>
    %119 = vector.broadcast %117 : vector<1x128xf32> to vector<8x128xf32>
    %120 = arith.mulf %118, %119 : vector<8x128xf32>
    %121 = arith.addf %115, %120 : vector<8x128xf32>
    %cst_19 = arith.constant 0.000000e+00 : f32
    %122 = vector.broadcast %cst_19 : f32 to vector<4x2xf32>
    %123 = vector.extract_strided_slice %64 {offsets = [0, 2], sizes = [4, 126], strides = [1, 1]} : vector<4x128xf32> to vector<4x126xf32>
    %124 = tpu.concatenate %123, %122 in 1 : vector<4x126xf32>, vector<4x2xf32> -> vector<4x128xf32>
    %125 = vector.extract_strided_slice %7 {offsets = [2, 0, 0], sizes = [1, 8, 4], strides = [1, 1, 1]} : vector<3x8x4xf32> to vector<1x8x4xf32>
    %126 = vector.shape_cast %125 : vector<1x8x4xf32> to vector<8x4xf32>
    %127 = vector.extract_strided_slice %126 {offsets = [0, 0], sizes = [8, 1], strides = [1, 1]} : vector<8x4xf32> to vector<8x1xf32>
    %128 = vector.extract_strided_slice %124 {offsets = [0, 0], sizes = [1, 128], strides = [1, 1]} : vector<4x128xf32> to vector<1x128xf32>
    %129 = vector.broadcast %127 : vector<8x1xf32> to vector<8x128xf32>
    %130 = vector.broadcast %128 : vector<1x128xf32> to vector<8x128xf32>
    %131 = arith.mulf %129, %130 : vector<8x128xf32>
    %132 = arith.addf %121, %131 : vector<8x128xf32>
    %133 = vector.extract_strided_slice %126 {offsets = [0, 1], sizes = [8, 1], strides = [1, 1]} : vector<8x4xf32> to vector<8x1xf32>
    %134 = vector.extract_strided_slice %124 {offsets = [1, 0], sizes = [1, 128], strides = [1, 1]} : vector<4x128xf32> to vector<1x128xf32>
    %135 = vector.broadcast %133 : vector<8x1xf32> to vector<8x128xf32>
    %136 = vector.broadcast %134 : vector<1x128xf32> to vector<8x128xf32>
    %137 = arith.mulf %135, %136 : vector<8x128xf32>
    %138 = arith.addf %132, %137 : vector<8x128xf32>
    %139 = vector.extract_strided_slice %126 {offsets = [0, 2], sizes = [8, 1], strides = [1, 1]} : vector<8x4xf32> to vector<8x1xf32>
    %140 = vector.extract_strided_slice %124 {offsets = [2, 0], sizes = [1, 128], strides = [1, 1]} : vector<4x128xf32> to vector<1x128xf32>
    %141 = vector.broadcast %139 : vector<8x1xf32> to vector<8x128xf32>
    %142 = vector.broadcast %140 : vector<1x128xf32> to vector<8x128xf32>
    %143 = arith.mulf %141, %142 : vector<8x128xf32>
    %144 = arith.addf %138, %143 : vector<8x128xf32>
    %145 = vector.extract_strided_slice %126 {offsets = [0, 3], sizes = [8, 1], strides = [1, 1]} : vector<8x4xf32> to vector<8x1xf32>
    %146 = vector.extract_strided_slice %124 {offsets = [3, 0], sizes = [1, 128], strides = [1, 1]} : vector<4x128xf32> to vector<1x128xf32>
    %147 = vector.broadcast %145 : vector<8x1xf32> to vector<8x128xf32>
    %148 = vector.broadcast %146 : vector<1x128xf32> to vector<8x128xf32>
    %149 = arith.mulf %147, %148 : vector<8x128xf32>
    %150 = arith.addf %144, %149 : vector<8x128xf32>
    %cst_20 = arith.constant 0.000000e+00 : f32
    %151 = vector.broadcast %cst_20 : f32 to vector<8x2xf32>
    %152 = vector.extract_strided_slice %150 {offsets = [0, 2], sizes = [8, 126], strides = [1, 1]} : vector<8x128xf32> to vector<8x126xf32>
    %153 = tpu.concatenate %152, %151 in 1 : vector<8x126xf32>, vector<8x2xf32> -> vector<8x128xf32>
    %154 = arith.maximumf %150, %153 : vector<8x128xf32>
    %155 = vector.shape_cast %6 : vector<4x1xf32> to vector<4x1xf32>
    %156 = vector.broadcast %155 : vector<4x1xf32> to vector<4x64xf32>
    %cst_21 = arith.constant 0.000000e+00 : f32
    %157 = vector.broadcast %cst_21 : f32 to vector<2x1xf32>
    %158 = vector.extract_strided_slice %1 {offsets = [0, 0], sizes = [2, 63], strides = [1, 1]} : vector<2x64xf32> to vector<2x63xf32>
    %159 = tpu.concatenate %157, %158 in 1 : vector<2x1xf32>, vector<2x63xf32> -> vector<2x64xf32>
    %160 = vector.extract_strided_slice %5 {offsets = [0, 0, 0], sizes = [1, 4, 2], strides = [1, 1, 1]} : vector<3x4x2xf32> to vector<1x4x2xf32>
    %161 = vector.shape_cast %160 : vector<1x4x2xf32> to vector<4x2xf32>
    %162 = vector.extract_strided_slice %161 {offsets = [0, 0], sizes = [4, 1], strides = [1, 1]} : vector<4x2xf32> to vector<4x1xf32>
    %163 = vector.extract_strided_slice %159 {offsets = [0, 0], sizes = [1, 64], strides = [1, 1]} : vector<2x64xf32> to vector<1x64xf32>
    %164 = vector.broadcast %162 : vector<4x1xf32> to vector<4x64xf32>
    %165 = vector.broadcast %163 : vector<1x64xf32> to vector<4x64xf32>
    %166 = arith.mulf %164, %165 : vector<4x64xf32>
    %167 = arith.addf %156, %166 : vector<4x64xf32>
    %168 = vector.extract_strided_slice %161 {offsets = [0, 1], sizes = [4, 1], strides = [1, 1]} : vector<4x2xf32> to vector<4x1xf32>
    %169 = vector.extract_strided_slice %159 {offsets = [1, 0], sizes = [1, 64], strides = [1, 1]} : vector<2x64xf32> to vector<1x64xf32>
    %170 = vector.broadcast %168 : vector<4x1xf32> to vector<4x64xf32>
    %171 = vector.broadcast %169 : vector<1x64xf32> to vector<4x64xf32>
    %172 = arith.mulf %170, %171 : vector<4x64xf32>
    %173 = arith.addf %167, %172 : vector<4x64xf32>
    %174 = vector.extract_strided_slice %5 {offsets = [1, 0, 0], sizes = [1, 4, 2], strides = [1, 1, 1]} : vector<3x4x2xf32> to vector<1x4x2xf32>
    %175 = vector.shape_cast %174 : vector<1x4x2xf32> to vector<4x2xf32>
    %176 = vector.extract_strided_slice %175 {offsets = [0, 0], sizes = [4, 1], strides = [1, 1]} : vector<4x2xf32> to vector<4x1xf32>
    %177 = vector.extract_strided_slice %1 {offsets = [0, 0], sizes = [1, 64], strides = [1, 1]} : vector<2x64xf32> to vector<1x64xf32>
    %178 = vector.broadcast %176 : vector<4x1xf32> to vector<4x64xf32>
    %179 = vector.broadcast %177 : vector<1x64xf32> to vector<4x64xf32>
    %180 = arith.mulf %178, %179 : vector<4x64xf32>
    %181 = arith.addf %173, %180 : vector<4x64xf32>
    %182 = vector.extract_strided_slice %175 {offsets = [0, 1], sizes = [4, 1], strides = [1, 1]} : vector<4x2xf32> to vector<4x1xf32>
    %183 = vector.extract_strided_slice %1 {offsets = [1, 0], sizes = [1, 64], strides = [1, 1]} : vector<2x64xf32> to vector<1x64xf32>
    %184 = vector.broadcast %182 : vector<4x1xf32> to vector<4x64xf32>
    %185 = vector.broadcast %183 : vector<1x64xf32> to vector<4x64xf32>
    %186 = arith.mulf %184, %185 : vector<4x64xf32>
    %187 = arith.addf %181, %186 : vector<4x64xf32>
    %cst_22 = arith.constant 0.000000e+00 : f32
    %188 = vector.broadcast %cst_22 : f32 to vector<2x1xf32>
    %189 = vector.extract_strided_slice %1 {offsets = [0, 1], sizes = [2, 63], strides = [1, 1]} : vector<2x64xf32> to vector<2x63xf32>
    %190 = tpu.concatenate %189, %188 in 1 : vector<2x63xf32>, vector<2x1xf32> -> vector<2x64xf32>
    %191 = vector.extract_strided_slice %5 {offsets = [2, 0, 0], sizes = [1, 4, 2], strides = [1, 1, 1]} : vector<3x4x2xf32> to vector<1x4x2xf32>
    %192 = vector.shape_cast %191 : vector<1x4x2xf32> to vector<4x2xf32>
    %193 = vector.extract_strided_slice %192 {offsets = [0, 0], sizes = [4, 1], strides = [1, 1]} : vector<4x2xf32> to vector<4x1xf32>
    %194 = vector.extract_strided_slice %190 {offsets = [0, 0], sizes = [1, 64], strides = [1, 1]} : vector<2x64xf32> to vector<1x64xf32>
    %195 = vector.broadcast %193 : vector<4x1xf32> to vector<4x64xf32>
    %196 = vector.broadcast %194 : vector<1x64xf32> to vector<4x64xf32>
    %197 = arith.mulf %195, %196 : vector<4x64xf32>
    %198 = arith.addf %187, %197 : vector<4x64xf32>
    %199 = vector.extract_strided_slice %192 {offsets = [0, 1], sizes = [4, 1], strides = [1, 1]} : vector<4x2xf32> to vector<4x1xf32>
    %200 = vector.extract_strided_slice %190 {offsets = [1, 0], sizes = [1, 64], strides = [1, 1]} : vector<2x64xf32> to vector<1x64xf32>
    %201 = vector.broadcast %199 : vector<4x1xf32> to vector<4x64xf32>
    %202 = vector.broadcast %200 : vector<1x64xf32> to vector<4x64xf32>
    %203 = arith.mulf %201, %202 : vector<4x64xf32>
    %204 = arith.addf %198, %203 : vector<4x64xf32>
    %cst_23 = arith.constant 0.000000e+00 : f32
    %205 = vector.broadcast %cst_23 : f32 to vector<4x64xf32>
    %206 = arith.maximumf %204, %205 : vector<4x64xf32>
    %cst_24 = arith.constant 0.000000e+00 : f32
    %207 = vector.broadcast %cst_24 : f32 to vector<4x1xf32>
    %208 = vector.extract_strided_slice %206 {offsets = [0, 1], sizes = [4, 63], strides = [1, 1]} : vector<4x64xf32> to vector<4x63xf32>
    %209 = tpu.concatenate %208, %207 in 1 : vector<4x63xf32>, vector<4x1xf32> -> vector<4x64xf32>
    %210 = arith.maximumf %206, %209 : vector<4x64xf32>
    %211 = vector.shape_cast %8 : vector<8x1xf32> to vector<8x1xf32>
    %212 = vector.broadcast %211 : vector<8x1xf32> to vector<8x64xf32>
    %cst_25 = arith.constant 0.000000e+00 : f32
    %213 = vector.broadcast %cst_25 : f32 to vector<4x2xf32>
    %214 = vector.extract_strided_slice %210 {offsets = [0, 0], sizes = [4, 62], strides = [1, 1]} : vector<4x64xf32> to vector<4x62xf32>
    %215 = tpu.concatenate %213, %214 in 1 : vector<4x2xf32>, vector<4x62xf32> -> vector<4x64xf32>
    %216 = vector.extract_strided_slice %7 {offsets = [0, 0, 0], sizes = [1, 8, 4], strides = [1, 1, 1]} : vector<3x8x4xf32> to vector<1x8x4xf32>
    %217 = vector.shape_cast %216 : vector<1x8x4xf32> to vector<8x4xf32>
    %218 = vector.extract_strided_slice %217 {offsets = [0, 0], sizes = [8, 1], strides = [1, 1]} : vector<8x4xf32> to vector<8x1xf32>
    %219 = vector.extract_strided_slice %215 {offsets = [0, 0], sizes = [1, 64], strides = [1, 1]} : vector<4x64xf32> to vector<1x64xf32>
    %220 = vector.broadcast %218 : vector<8x1xf32> to vector<8x64xf32>
    %221 = vector.broadcast %219 : vector<1x64xf32> to vector<8x64xf32>
    %222 = arith.mulf %220, %221 : vector<8x64xf32>
    %223 = arith.addf %212, %222 : vector<8x64xf32>
    %224 = vector.extract_strided_slice %217 {offsets = [0, 1], sizes = [8, 1], strides = [1, 1]} : vector<8x4xf32> to vector<8x1xf32>
    %225 = vector.extract_strided_slice %215 {offsets = [1, 0], sizes = [1, 64], strides = [1, 1]} : vector<4x64xf32> to vector<1x64xf32>
    %226 = vector.broadcast %224 : vector<8x1xf32> to vector<8x64xf32>
    %227 = vector.broadcast %225 : vector<1x64xf32> to vector<8x64xf32>
    %228 = arith.mulf %226, %227 : vector<8x64xf32>
    %229 = arith.addf %223, %228 : vector<8x64xf32>
    %230 = vector.extract_strided_slice %217 {offsets = [0, 2], sizes = [8, 1], strides = [1, 1]} : vector<8x4xf32> to vector<8x1xf32>
    %231 = vector.extract_strided_slice %215 {offsets = [2, 0], sizes = [1, 64], strides = [1, 1]} : vector<4x64xf32> to vector<1x64xf32>
    %232 = vector.broadcast %230 : vector<8x1xf32> to vector<8x64xf32>
    %233 = vector.broadcast %231 : vector<1x64xf32> to vector<8x64xf32>
    %234 = arith.mulf %232, %233 : vector<8x64xf32>
    %235 = arith.addf %229, %234 : vector<8x64xf32>
    %236 = vector.extract_strided_slice %217 {offsets = [0, 3], sizes = [8, 1], strides = [1, 1]} : vector<8x4xf32> to vector<8x1xf32>
    %237 = vector.extract_strided_slice %215 {offsets = [3, 0], sizes = [1, 64], strides = [1, 1]} : vector<4x64xf32> to vector<1x64xf32>
    %238 = vector.broadcast %236 : vector<8x1xf32> to vector<8x64xf32>
    %239 = vector.broadcast %237 : vector<1x64xf32> to vector<8x64xf32>
    %240 = arith.mulf %238, %239 : vector<8x64xf32>
    %241 = arith.addf %235, %240 : vector<8x64xf32>
    %242 = vector.extract_strided_slice %7 {offsets = [1, 0, 0], sizes = [1, 8, 4], strides = [1, 1, 1]} : vector<3x8x4xf32> to vector<1x8x4xf32>
    %243 = vector.shape_cast %242 : vector<1x8x4xf32> to vector<8x4xf32>
    %244 = vector.extract_strided_slice %243 {offsets = [0, 0], sizes = [8, 1], strides = [1, 1]} : vector<8x4xf32> to vector<8x1xf32>
    %245 = vector.extract_strided_slice %210 {offsets = [0, 0], sizes = [1, 64], strides = [1, 1]} : vector<4x64xf32> to vector<1x64xf32>
    %246 = vector.broadcast %244 : vector<8x1xf32> to vector<8x64xf32>
    %247 = vector.broadcast %245 : vector<1x64xf32> to vector<8x64xf32>
    %248 = arith.mulf %246, %247 : vector<8x64xf32>
    %249 = arith.addf %241, %248 : vector<8x64xf32>
    %250 = vector.extract_strided_slice %243 {offsets = [0, 1], sizes = [8, 1], strides = [1, 1]} : vector<8x4xf32> to vector<8x1xf32>
    %251 = vector.extract_strided_slice %210 {offsets = [1, 0], sizes = [1, 64], strides = [1, 1]} : vector<4x64xf32> to vector<1x64xf32>
    %252 = vector.broadcast %250 : vector<8x1xf32> to vector<8x64xf32>
    %253 = vector.broadcast %251 : vector<1x64xf32> to vector<8x64xf32>
    %254 = arith.mulf %252, %253 : vector<8x64xf32>
    %255 = arith.addf %249, %254 : vector<8x64xf32>
    %256 = vector.extract_strided_slice %243 {offsets = [0, 2], sizes = [8, 1], strides = [1, 1]} : vector<8x4xf32> to vector<8x1xf32>
    %257 = vector.extract_strided_slice %210 {offsets = [2, 0], sizes = [1, 64], strides = [1, 1]} : vector<4x64xf32> to vector<1x64xf32>
    %258 = vector.broadcast %256 : vector<8x1xf32> to vector<8x64xf32>
    %259 = vector.broadcast %257 : vector<1x64xf32> to vector<8x64xf32>
    %260 = arith.mulf %258, %259 : vector<8x64xf32>
    %261 = arith.addf %255, %260 : vector<8x64xf32>
    %262 = vector.extract_strided_slice %243 {offsets = [0, 3], sizes = [8, 1], strides = [1, 1]} : vector<8x4xf32> to vector<8x1xf32>
    %263 = vector.extract_strided_slice %210 {offsets = [3, 0], sizes = [1, 64], strides = [1, 1]} : vector<4x64xf32> to vector<1x64xf32>
    %264 = vector.broadcast %262 : vector<8x1xf32> to vector<8x64xf32>
    %265 = vector.broadcast %263 : vector<1x64xf32> to vector<8x64xf32>
    %266 = arith.mulf %264, %265 : vector<8x64xf32>
    %267 = arith.addf %261, %266 : vector<8x64xf32>
    %cst_26 = arith.constant 0.000000e+00 : f32
    %268 = vector.broadcast %cst_26 : f32 to vector<4x2xf32>
    %269 = vector.extract_strided_slice %210 {offsets = [0, 2], sizes = [4, 62], strides = [1, 1]} : vector<4x64xf32> to vector<4x62xf32>
    %270 = tpu.concatenate %269, %268 in 1 : vector<4x62xf32>, vector<4x2xf32> -> vector<4x64xf32>
    %271 = vector.extract_strided_slice %7 {offsets = [2, 0, 0], sizes = [1, 8, 4], strides = [1, 1, 1]} : vector<3x8x4xf32> to vector<1x8x4xf32>
    %272 = vector.shape_cast %271 : vector<1x8x4xf32> to vector<8x4xf32>
    %273 = vector.extract_strided_slice %272 {offsets = [0, 0], sizes = [8, 1], strides = [1, 1]} : vector<8x4xf32> to vector<8x1xf32>
    %274 = vector.extract_strided_slice %270 {offsets = [0, 0], sizes = [1, 64], strides = [1, 1]} : vector<4x64xf32> to vector<1x64xf32>
    %275 = vector.broadcast %273 : vector<8x1xf32> to vector<8x64xf32>
    %276 = vector.broadcast %274 : vector<1x64xf32> to vector<8x64xf32>
    %277 = arith.mulf %275, %276 : vector<8x64xf32>
    %278 = arith.addf %267, %277 : vector<8x64xf32>
    %279 = vector.extract_strided_slice %272 {offsets = [0, 1], sizes = [8, 1], strides = [1, 1]} : vector<8x4xf32> to vector<8x1xf32>
    %280 = vector.extract_strided_slice %270 {offsets = [1, 0], sizes = [1, 64], strides = [1, 1]} : vector<4x64xf32> to vector<1x64xf32>
    %281 = vector.broadcast %279 : vector<8x1xf32> to vector<8x64xf32>
    %282 = vector.broadcast %280 : vector<1x64xf32> to vector<8x64xf32>
    %283 = arith.mulf %281, %282 : vector<8x64xf32>
    %284 = arith.addf %278, %283 : vector<8x64xf32>
    %285 = vector.extract_strided_slice %272 {offsets = [0, 2], sizes = [8, 1], strides = [1, 1]} : vector<8x4xf32> to vector<8x1xf32>
    %286 = vector.extract_strided_slice %270 {offsets = [2, 0], sizes = [1, 64], strides = [1, 1]} : vector<4x64xf32> to vector<1x64xf32>
    %287 = vector.broadcast %285 : vector<8x1xf32> to vector<8x64xf32>
    %288 = vector.broadcast %286 : vector<1x64xf32> to vector<8x64xf32>
    %289 = arith.mulf %287, %288 : vector<8x64xf32>
    %290 = arith.addf %284, %289 : vector<8x64xf32>
    %291 = vector.extract_strided_slice %272 {offsets = [0, 3], sizes = [8, 1], strides = [1, 1]} : vector<8x4xf32> to vector<8x1xf32>
    %292 = vector.extract_strided_slice %270 {offsets = [3, 0], sizes = [1, 64], strides = [1, 1]} : vector<4x64xf32> to vector<1x64xf32>
    %293 = vector.broadcast %291 : vector<8x1xf32> to vector<8x64xf32>
    %294 = vector.broadcast %292 : vector<1x64xf32> to vector<8x64xf32>
    %295 = arith.mulf %293, %294 : vector<8x64xf32>
    %296 = arith.addf %290, %295 : vector<8x64xf32>
    %cst_27 = arith.constant 0.000000e+00 : f32
    %297 = vector.broadcast %cst_27 : f32 to vector<8x2xf32>
    %298 = vector.extract_strided_slice %296 {offsets = [0, 2], sizes = [8, 62], strides = [1, 1]} : vector<8x64xf32> to vector<8x62xf32>
    %299 = tpu.concatenate %298, %297 in 1 : vector<8x62xf32>, vector<8x2xf32> -> vector<8x64xf32>
    %300 = arith.maximumf %296, %299 : vector<8x64xf32>
    %c0_28 = arith.constant 0 : index
    %c0_29 = arith.constant 0 : index
    %301 = vector.load %arg7[%c0_28, %c0_29] : memref<8x128xf32, #tpu.memory_space<vmem>>, vector<8x128xf32>
    %302 = arith.mulf %154, %301 : vector<8x128xf32>
    %cst_30 = arith.constant dense<0.000000e+00> : vector<8xf32>
    %303 = vector.multi_reduction <add>, %302, %cst_30 [1] : vector<8x128xf32> to vector<8xf32>
    %304 = vector.shape_cast %303 : vector<8xf32> to vector<8x1xf32>
    %cst_31 = arith.constant dense<0.000000e+00> : vector<1xf32>
    %305 = vector.multi_reduction <add>, %304, %cst_31 [0] : vector<8x1xf32> to vector<1xf32>
    %306 = vector.shape_cast %305 : vector<1xf32> to vector<1x1xf32>
    %c0_32 = arith.constant 0 : index
    %c0_33 = arith.constant 0 : index
    %307 = vector.load %arg9[%c0_32, %c0_33] : memref<1x1xf32, #tpu.memory_space<vmem>>, vector<1x1xf32>
    %308 = arith.addf %306, %307 : vector<1x1xf32>
    %c0_34 = arith.constant 0 : index
    %c0_35 = arith.constant 0 : index
    %309 = vector.load %arg8[%c0_34, %c0_35] : memref<8x64xf32, #tpu.memory_space<vmem>>, vector<8x64xf32>
    %310 = arith.mulf %300, %309 : vector<8x64xf32>
    %cst_36 = arith.constant dense<0.000000e+00> : vector<8xf32>
    %311 = vector.multi_reduction <add>, %310, %cst_36 [1] : vector<8x64xf32> to vector<8xf32>
    %312 = vector.shape_cast %311 : vector<8xf32> to vector<8x1xf32>
    %cst_37 = arith.constant dense<0.000000e+00> : vector<1xf32>
    %313 = vector.multi_reduction <add>, %312, %cst_37 [0] : vector<8x1xf32> to vector<1xf32>
    %314 = vector.shape_cast %313 : vector<1xf32> to vector<1x1xf32>
    %c0_38 = arith.constant 0 : index
    %c0_39 = arith.constant 0 : index
    %315 = vector.load %arg10[%c0_38, %c0_39] : memref<1x1xf32, #tpu.memory_space<vmem>>, vector<1x1xf32>
    %316 = arith.addf %314, %315 : vector<1x1xf32>
    %317 = arith.mulf %308, %316 : vector<1x1xf32>
    %c0_40 = arith.constant 0 : index
    %c0_41 = arith.constant 0 : index
    %c0_42 = arith.constant 0 : index
    %318 = vector.load %arg12[%c0_40, %c0_41, %c0_42] : memref<1x1x1xf32, #tpu.memory_space<vmem>>, vector<1x1x1xf32>
    %319 = vector.shape_cast %318 : vector<1x1x1xf32> to vector<1x1xf32>
    %320 = vector.shape_cast %317 : vector<1x1xf32> to vector<1x1x1xf32>
    tpu.vector_store %arg12[%c0_40, %c0_41, %c0_42], %320 {strides = array<i32>} : memref<1x1x1xf32, #tpu.memory_space<vmem>>, vector<1x1x1xf32>,
    %cst_43 = arith.constant 1.000000e+00 : f32
    %321 = vector.broadcast %cst_43 : f32 to vector<1x1xf32>
    %c0_44 = arith.constant 0 : index
    %c0_45 = arith.constant 0 : index
    %c0_46 = arith.constant 0 : index
    %322 = vector.load %arg11[%c0_44, %c0_45, %c0_46] : memref<1x1x1xf32, #tpu.memory_space<vmem>>, vector<1x1x1xf32>
    %323 = vector.shape_cast %322 : vector<1x1x1xf32> to vector<1x1xf32>
    %324 = vector.shape_cast %321 : vector<1x1xf32> to vector<1x1x1xf32>
    tpu.vector_store %arg11[%c0_44, %c0_45, %c0_46], %324 {strides = array<i32>} : memref<1x1x1xf32, #tpu.memory_space<vmem>>, vector<1x1x1xf32>,
    %c0_47 = arith.constant 0 : index
    %c0_48 = arith.constant 0 : index
    %c0_49 = arith.constant 0 : index
    %325 = vector.load %arg13[%c0_47, %c0_48, %c0_49] : memref<1x8x128xf32, #tpu.memory_space<vmem>>, vector<1x8x128xf32>
    %326 = vector.shape_cast %325 : vector<1x8x128xf32> to vector<8x128xf32>
    %327 = vector.shape_cast %154 : vector<8x128xf32> to vector<1x8x128xf32>
    tpu.vector_store %arg13[%c0_47, %c0_48, %c0_49], %327 {strides = array<i32>} : memref<1x8x128xf32, #tpu.memory_space<vmem>>, vector<1x8x128xf32>,
    %c0_50 = arith.constant 0 : index
    %c0_51 = arith.constant 0 : index
    %c0_52 = arith.constant 0 : index
    %328 = vector.load %arg14[%c0_50, %c0_51, %c0_52] : memref<1x8x64xf32, #tpu.memory_space<vmem>>, vector<1x8x64xf32>
    %329 = vector.shape_cast %328 : vector<1x8x64xf32> to vector<8x64xf32>
    %330 = vector.shape_cast %300 : vector<8x64xf32> to vector<1x8x64xf32>
    tpu.vector_store %arg14[%c0_50, %c0_51, %c0_52], %330 {strides = array<i32>} : memref<1x8x64xf32, #tpu.memory_space<vmem>>, vector<1x8x64xf32>,
    return
  }
  func.func @transform_0(%arg0: i32) -> (i32, i32, i32) {
    %c0_i32 = arith.constant 0 : i32
    %c0_i32_0 = arith.constant 0 : i32
    %c0_i32_1 = arith.constant 0 : i32
    return %arg0, %c0_i32, %c0_i32_0 : i32, i32, i32
  }
  func.func @transform_1(%arg0: i32) -> (i32, i32, i32) {
    %c0_i32 = arith.constant 0 : i32
    %c0_i32_0 = arith.constant 0 : i32
    %c0_i32_1 = arith.constant 0 : i32
    return %arg0, %c0_i32, %c0_i32_0 : i32, i32, i32
  }
  func.func @transform_2(%arg0: i32) -> (i32, i32, i32) {
    %c0_i32 = arith.constant 0 : i32
    %c0_i32_0 = arith.constant 0 : i32
    %c0_i32_1 = arith.constant 0 : i32
    %c0_i32_2 = arith.constant 0 : i32
    return %c0_i32, %c0_i32_0, %c0_i32_1 : i32, i32, i32
  }
  func.func @transform_3(%arg0: i32) -> (i32, i32) {
    %c0_i32 = arith.constant 0 : i32
    %c0_i32_0 = arith.constant 0 : i32
    %c0_i32_1 = arith.constant 0 : i32
    return %c0_i32, %c0_i32_0 : i32, i32
  }
  func.func @transform_4(%arg0: i32) -> (i32, i32, i32) {
    %c0_i32 = arith.constant 0 : i32
    %c0_i32_0 = arith.constant 0 : i32
    %c0_i32_1 = arith.constant 0 : i32
    %c0_i32_2 = arith.constant 0 : i32
    return %c0_i32, %c0_i32_0, %c0_i32_1 : i32, i32, i32
  }
  func.func @transform_5(%arg0: i32) -> (i32, i32) {
    %c0_i32 = arith.constant 0 : i32
    %c0_i32_0 = arith.constant 0 : i32
    %c0_i32_1 = arith.constant 0 : i32
    return %c0_i32, %c0_i32_0 : i32, i32
  }
  func.func @transform_6(%arg0: i32) -> (i32, i32) {
    %c0_i32 = arith.constant 0 : i32
    %c0_i32_0 = arith.constant 0 : i32
    %c0_i32_1 = arith.constant 0 : i32
    return %c0_i32, %c0_i32_0 : i32, i32
  }
  func.func @transform_7(%arg0: i32) -> (i32, i32) {
    %c0_i32 = arith.constant 0 : i32
    %c0_i32_0 = arith.constant 0 : i32
    %c0_i32_1 = arith.constant 0 : i32
    return %c0_i32, %c0_i32_0 : i32, i32
  }
  func.func @transform_8(%arg0: i32) -> (i32, i32) {
    %c0_i32 = arith.constant 0 : i32
    %c0_i32_0 = arith.constant 0 : i32
    %c0_i32_1 = arith.constant 0 : i32
    return %c0_i32, %c0_i32_0 : i32, i32
  }
  func.func @transform_9(%arg0: i32) -> (i32, i32) {
    %c0_i32 = arith.constant 0 : i32
    %c0_i32_0 = arith.constant 0 : i32
    %c0_i32_1 = arith.constant 0 : i32
    return %c0_i32, %c0_i32_0 : i32, i32
  }
  func.func @transform_10(%arg0: i32) -> (i32, i32, i32) {
    %c0_i32 = arith.constant 0 : i32
    %c0_i32_0 = arith.constant 0 : i32
    %c0_i32_1 = arith.constant 0 : i32
    return %arg0, %c0_i32, %c0_i32_0 : i32, i32, i32
  }
  func.func @transform_11(%arg0: i32) -> (i32, i32, i32) {
    %c0_i32 = arith.constant 0 : i32
    %c0_i32_0 = arith.constant 0 : i32
    %c0_i32_1 = arith.constant 0 : i32
    return %arg0, %c0_i32, %c0_i32_0 : i32, i32, i32
  }
  func.func @transform_12(%arg0: i32) -> (i32, i32, i32) {
    %c0_i32 = arith.constant 0 : i32
    %c0_i32_0 = arith.constant 0 : i32
    %c0_i32_1 = arith.constant 0 : i32
    return %arg0, %c0_i32, %c0_i32_0 : i32, i32, i32
  }
  func.func @transform_13(%arg0: i32) -> (i32, i32, i32) {
    %c0_i32 = arith.constant 0 : i32
    %c0_i32_0 = arith.constant 0 : i32
    %c0_i32_1 = arith.constant 0 : i32
    return %arg0, %c0_i32, %c0_i32_0 : i32, i32, i32
  }
}

</mosaic_0001>

<bundles_post_ra>
// kernel: tpu_custom_call.1
= control target key start
LH: loop header
LB: loop body
LE: loop exit
PB: predicated region body
PF: predicated region fallthrough
CT: control target
= control target key end

     0   :  { %s1621_s0 = inlined_call_operand.vmem [shape: f32[2,2,64], index: 0, kind: input, shape index: {}]   ;;  %s1622_s1 = inlined_call_operand.vmem [shape: f32[2,2,64], index: 1, kind: input, shape index: {}]   ;;  %s1623_s2 = inlined_call_operand.vmem [shape: f32[3,4,2], index: 2, kind: input, shape index: {}]   ;;  %s1624_s3 = inlined_call_operand.vmem [shape: f32[4,1], index: 3, kind: input, shape index: {}]   ;;  %s1625_s4 = inlined_call_operand.vmem [shape: f32[3,8,4], index: 4, kind: input, shape index: {}]   ;;  %s1626_s5 = inlined_call_operand.vmem [shape: f32[8,1], index: 5, kind: input, shape index: {}]   ;;  %s1627_s6 = inlined_call_operand.vmem [shape: f32[8,128], index: 6, kind: input, shape index: {}]   ;;  %s1628_s7 = inlined_call_operand.vmem [shape: f32[8,64], index: 7, kind: input, shape index: {}]   ;;  %s1629_s8 = inlined_call_operand.<no memory space> [shape: f32[1,1], index: 8, kind: input, shape index: {}]   ;;  %s1630_s10 = inlined_call_operand.vmem [shape: f32[2,1,1], index: 10, kind: output, shape index: {0}]   ;;  %s1631_s11 = inlined_call_operand.vmem [shape: f32[2,1,1], index: 11, kind: output, shape index: {1}]   ;;  %s1632_s12 = inlined_call_operand.hbm [shape: f32[2,8,128], index: 12, kind: output, shape index: {2}]   ;;  %s1633_s13 = inlined_call_operand.hbm [shape: f32[2,8,64], index: 13, kind: output, shape index: {3}]   ;;  %s1634_s9 = inlined_call_operand.<no memory space> [shape: f32[1,1], index: 9, kind: input, shape index: {}]  }
   0x1   :  { %1636 = sst [smem:[#allocation11_spill]] %s1621_s0  ;;  %v19_v0 = vstv %s1629_s8  ;;  %v21_v1 = vstv %s1634_s9 }
   0x2   :  { %1637 = sst [smem:[#allocation12_spill]] %s1622_s1  ;;  %20 = vst [vmem:[#allocation2] sm:$0x1] %v19_v0  ;;  %22 = vst [vmem:[#allocation3] sm:$0x1] %v21_v1 }
   0x3   :  { %1638 = sst [smem:[#allocation13_spill]] %s1623_s2 }
   0x4   :  { %1639 = sst [smem:[#allocation14_spill]] %s1624_s3 }
   0x5   :  { %1640 = sst [smem:[#allocation15_spill]] %s1625_s4 }
   0x6   :  { %23 = vsyncpa [#allocation5], 0 }
   0x7   :  { %25 = vsyncpa [#allocation5 + $0x1], 0 }
   0x8   :  { %26 = vsyncpa [#allocation7], 0 }
   0x9   :  { %28 = vsyncpa [#allocation7 + $0x1], 0  ;;  %s1355_s29 = smov 0   ;;  %s1357_s30 = smov 0  }
   0xa   :  { %s1359_s14 = smov 0   ;;  %s1361_s15 = smov 0  }
   0xb LB: > { %s1376_s8 = sadd.s32 4294967295, %s1265_s15   ;;  %s1088_s9 = sadd.s32 4294967294, %s1265_s15   ;;  %s1265_s15 = sphi %s1361_s15, %s1654_s15   ;;  %s1261_s14 = sphi %s1359_s14, %s1653_s14   ;;  %s1257_s30 = sphi %s1357_s30, %s1652_s30   ;;  %s1253_s29 = sphi %s1355_s29, %s1651_s29  }
   0xc   : > { %s1380_s16 = sadd.s32 1, %s1265_s15   ;;  %s313_s17 = sadd.s32 1, %s1261_s14 }
   0xd   : > { %s310_s18 = ssub.s32 %s1265_s15, %s1380_s16  ;;  %p323_p0 = scmp.ne.s32.totalorder %s1261_s14, %s1257_s30 }
   0xe   : > { %p311_p1 = scmp.eq.s32.totalorder %s310_s18, 0  ;;  %p324_p2 = scmp.eq.s32.totalorder %s1376_s8, 1 }
   0xf   : > { %p329_p3 = scmp.ne.s32.totalorder %s1257_s30, %s1253_s29  ;;  %p330_p4 = scmp.eq.s32.totalorder %s1088_s9, 1 }
  0x10   : > { %s1391_s19 = scalar_select %p311_p1, %s1261_s14, %s313_s17  }
  0x11   : > { %p1393_p5 = por %p324_p2, %p323_p0  ;;  %p1397_p6 = por %p330_p4, %p329_p3 }
  0x12   : > { %1641 = sst [smem:[#allocation10_spill]] %s1391_s19  ;;  %p1091_p7 = scmp.ge.s32.totalorder %s1265_s15, 1 }
  0x13   : > { %p412_p8 = scmp.lt.s32.totalorder %s1265_s15, 3 }
  0x15   : > { %p413_p9 = pnand %p1091_p7, %p412_p8 }
  0x16   : > { %s1644_s3 = sld [smem:[#allocation14_spill]] (!%p413_p9)  ;;  %p470_p10 = scmp.lt.s32.totalorder (!%p413_p9), %s1376_s8, 1 }
  0x17   : > { %416 = sbr.rel (%p413_p9) target bundleno = 839 (0x347), region = 60  ;;  %s1645_s2 = sld [smem:[#allocation13_spill]] (!%p413_p9) }
  0x18   : > { %s1646_s1 = sld [smem:[#allocation12_spill]] (!%p413_p9)  ;;  %s1270_s19 = smov (!%p413_p9), 64  }
  0x19   : > { %s1647_s0 = sld [smem:[#allocation11_spill]] (!%p413_p9)  ;;  %s1271_s28 = smov (!%p413_p9), 1  }
  0x1a   : > { %s1648_s4 = sld [smem:[#allocation15_spill]] (!%p413_p9)  ;;  %s1275_s9 = smov (!%p413_p9), 2  }
  0x1b   : > { %s1276_s22 = smov (!%p413_p9), 126   ;;  %s1635_s18 = sshll.u32 (!%p413_p9), %s1376_s8, 7 }
  0x1c   : > { %v495_v2 = vld [vmem:[%s1644_s3] sm:$0xf]  ;;  %v1267_v3 = vmov 0   ;;  %s1410_s24 = scalar_select %p470_p10, %s1376_s8, 1  ;;  %vm898_vm0 = vcmask 0   ;;  %v1268_v5 = vmov 1   ;;  %v516_v17 = vlaneseq }
  0x1d   : > { %1157 = vset.pattern.permute.xlu1 %v1267_v3  ;;  %1156 = vset.pattern.permute.xlu0 %v1267_v3  ;;  %v492_v4 = vld [vmem:[%s1645_s2] sm:$0xf]  ;;  %v1269_v6 = vmov 1.0   ;;  %v493_v9 = vld [vmem:[%s1645_s2 + $0x4] sm:$0xf]  ;;  %vm490_vm1 = vcmask 523264  }
  0x1e   : > { %502 = vperm.xlu1 %1157, %v495_v2   ;;  %s1094_s27 = sshll.u32 %s1410_s24, 1  ;;  %s480_s17 = scalar_lea.vmem %s1630_s10, %s1410_s24  ;;  %v494_v10 = vld [vmem:[%s1645_s2 + $0x8] sm:$0xf]  ;;  %v1447_v19 = vshrl.u32 %v516_v17, 7  ;;  %vm509_vm2 = vcmask 7168   ;;  %vm556_vm3 = vcmask 1039360  }
  0x1f   : > { %s477_s23 = scalar_lea.vmem %s1646_s1, %s1094_s27  ;;  %900 = vst.msk [vmem:[%s480_s17] sm:$0x1] %vm898_vm0, %v1269_v6  ;;  %s473_s26 = scalar_lea.vmem %s1647_s0, %s1094_s27  ;;  %vm763_vm4 = vcmask 515072   ;;  %v499_v6 = vld [vmem:[%s1626_s5] sm:$0xff]  ;;  %vm595_vm5 = vcmask 15360   ;;  %vm682_vm6 = vcmask 1031168  }
  0x20   : > { %v485_v7 = vld [vmem:[%s477_s23] sm:$0x3]  ;;  %s1272_s3 = smov 127   ;;  %v1450_v21 = vsub.s32 0, %v1447_v19  ;;  %v1453_v26 = vsub.s32 1, %v1447_v19  ;;  %vm840_vm7 = vcmask 506880   ;;  %s932_s23 = scalar_lea.hbm %s1632_s12, %s1635_s18 }
  0x21   : > { %487 = vrot.lane.b32.xlu0 %v485_v7, %s1270_s19  ;;  %v1428_v8 = vld [vmem:[%s473_s26] sm:$0x3] }
  0x22   : > { %1158 = vset.pattern.permute.xlu1 %v1268_v5  ;;  %v751_v40 = vrot.slane %v1428_v8, %v1450_v21  ;;  %v757_v45 = vrot.slane %v1428_v8, %v1453_v26 }
  0x23   : > { %523 = vperm.xlu1 %1158, %v492_v4  }
  0x25   : > { %513 = vperm.xlu0 %1156, %v492_v4  }
  0x27   : > { %732 = vrot.lane.b32.xlu1 %v1428_v8, %s1271_s28 }
  0x28   : > { %1159 = vset.pattern.permute.xlu1 %v1267_v3 }
  0x29   : > { %1160 = vset.pattern.permute.xlu0 %v1268_v5 }
  0x2b   : > { %534 = vperm.xlu1 %1159, %v493_v9  }
  0x2f   : > { %560 = vperm.xlu1 %1159, %v494_v10  }
  0x33   : > { %1161 = vset.pattern.permute.xlu1 %v1268_v5 }
  0x34   : > { %570 = vperm.xlu1 %1161, %v494_v10   ;;  %v1273_v10 = vmov 3  }
  0x38   : > { %1163 = vset.pattern.permute.xlu1 %v1267_v3 }
  0x93   : > { %v488_v11 = vpop.permute.xlu0 %487 }
  0x94   : > { %v491_v12 = vsel %vm490_vm1, %v1428_v8, %v488_v11  ;;  %v1274_v11 = vmov 2  }
  0x95   : > { %553 = vrot.lane.b32.xlu1 %v491_v12, %s1272_s3  ;;  %506 = vrot.lane.b32.xlu0 %v491_v12, %s1271_s28  ;;  %v540_v37 = vrot.slane %v491_v12, %v1450_v21  ;;  %v550_v44 = vrot.slane %v491_v12, %v1453_v26  ;;  %v497_v12 = vld [vmem:[%s1648_s4 + $0x8] sm:$0xff]  ;;  %s1277_s28 = smov [#allocation4]  }
  0x96   : > { %s1179_s1 = sshll.u32 %s1277_s28, 4  ;;  %s1180_s1 = int_to_ptr.vmem [resolvable:$false] %s1179_s1 }
  0x99   : > { %544 = vperm.xlu0 %1160, %v493_v9   ;;  %v503_v13 = vpop.permute.xlu1 %502  ;;  %v496_v9 = vld [vmem:[%s1648_s4] sm:$0xff] }
  0x9d   : > { %760 = vrot.lane.b32.xlu0 %v1428_v8, %s1272_s3 }
  0x9e   : > { %1162 = vset.pattern.permute.xlu0 %v1267_v3  ;;  %v524_v14 = vpop.permute.xlu1 %523 }
  0xa0   : > { %v514_v20 = vpop.permute.xlu0 %513 }
  0xa2   : > { %v733_v15 = vpop.permute.xlu1 %732 }
  0xa3   : > { %v735_v22 = vsel %vm509_vm2, 0.0, %v733_v15 }
  0xa4   : > { %v739_v28 = vrot.slane %v735_v22, %v1450_v21  ;;  %v745_v33 = vrot.slane %v735_v22, %v1453_v26 }
  0xa6   : > { %v535_v16 = vpop.permute.xlu1 %534  ;;  %v740_v34 = vmul.f32 %v739_v28, %v514_v20  ;;  %v746_v39 = vmul.f32 %v745_v33, %v524_v14 }
  0xa7   : > { %v541_v42 = vmul.f32 %v540_v37, %v535_v16  ;;  %v752_v50 = vmul.f32 %v751_v40, %v535_v16  ;;  %v1511_v40 = vsub.s32 3, %v1447_v19 }
  0xa8   : > { %v741_v41 = vadd.f32 %v740_v34, %v503_v13 }
  0xaa   : > { %v561_v18 = vpop.permute.xlu1 %560  ;;  %v747_v51 = vadd.f32 %v746_v39, %v741_v41 }
  0xac   : > { %v753_v59 = vadd.f32 %v752_v50, %v747_v51 }
  0xaf   : > { %v571_v23 = vpop.permute.xlu1 %570 }
 0x107   : > { %v507_v24 = vpop.permute.xlu0 %506  ;;  %v554_v31 = vpop.permute.xlu1 %553 }
 0x108   : > { %v510_v25 = vsel %vm509_vm2, 0.0, %v507_v24  ;;  %v557_v36 = vsel %vm556_vm3, %v554_v31, 0.0 }
 0x109   : > { %v519_v27 = vrot.slane %v510_v25, %v1450_v21  ;;  %v529_v30 = vrot.slane %v510_v25, %v1453_v26  ;;  %v566_v43 = vrot.slane %v557_v36, %v1450_v21  ;;  %v576_v47 = vrot.slane %v557_v36, %v1453_v26 }
 0x10b   : > { %v520_v29 = vmul.f32 %v519_v27, %v514_v20  ;;  %v530_v35 = vmul.f32 %v529_v30, %v524_v14  ;;  %v567_v52 = vmul.f32 %v566_v43, %v561_v18  ;;  %v577_v56 = vmul.f32 %v576_v47, %v571_v23  ;;  %v498_v20 = vld [vmem:[%s1648_s4 + $0x10] sm:$0xff] }
 0x10d   : > { %v521_v32 = vadd.f32 %v520_v29, %v503_v13 }
 0x10f   : > { %v531_v38 = vadd.f32 %v530_v35, %v521_v32  ;;  %v1505_v32 = vsub.s32 2, %v1447_v19 }
 0x111   : > { %v542_v48 = vadd.f32 %v541_v42, %v531_v38 }
 0x114   : > { %v545_v46 = vpop.permute.xlu0 %544 }
 0x115   : > { %v551_v49 = vmul.f32 %v550_v44, %v545_v46  ;;  %v758_v54 = vmul.f32 %v757_v45, %v545_v46 }
 0x117   : > { %v552_v53 = vadd.f32 %v551_v49, %v542_v48  ;;  %v759_v63 = vadd.f32 %v758_v54, %v753_v59 }
 0x118   : > { %v761_v55 = vpop.permute.xlu0 %760 }
 0x119   : > { %v568_v57 = vadd.f32 %v567_v52, %v552_v53  ;;  %v764_v58 = vsel %vm763_vm4, %v761_v55, 0.0 }
 0x11a   : > { %v768_v60 = vrot.slane %v764_v58, %v1450_v21  ;;  %v774_v61 = vrot.slane %v764_v58, %v1453_v26 }
 0x11b   : > { %v578_v62 = vadd.f32 %v577_v56, %v568_v57 }
 0x11c   : > { %v769_v0 = vmul.f32 %v768_v60, %v561_v18  ;;  %v775_v4 = vmul.f32 %v774_v61, %v571_v23 }
 0x11d   : > { %v579_v1 = vmax.f32 %v578_v62, 0.0 }
 0x11e   : > { %v770_v2 = vadd.f32 %v769_v0, %v759_v63 }
 0x11f   : > { %581 = vrot.lane.b32.xlu1 %v579_v1, %s1272_s3 }
 0x120   : > { %v776_v7 = vadd.f32 %v775_v4, %v770_v2 }
 0x122   : > { %v777_v8 = vmax.f32 %v776_v7, 0.0 }
 0x123   : > { %588 = vperm.xlu1 %1163, %v499_v6  }
 0x124   : > { %779 = vrot.lane.b32.xlu0 %v777_v8, %s1272_s3  ;;  %s1545_s3 = sand.u32 1, %s1257_s30  }
 0x125   : > { %s1092_s19 = sshll.u32 %s1545_s3, 3  ;;  %s910_s0 = scalar_lea.sflag [#allocation5], %s1545_s3 }
 0x126   : > { %s1552_s25 = scalar_lea.vmem [#allocation6], %s1092_s19 }
 0x127   : > { %1164 = vset.pattern.permute.xlu1 %v1268_v5 }
 0x128   : > { %609 = vperm.xlu1 %1164, %v496_v9   ;;  %599 = vperm.xlu0 %1162, %v496_v9  }
 0x12c   : > { %1166 = vset.pattern.permute.xlu1 %v1273_v10  ;;  %1165 = vset.pattern.permute.xlu0 %v1274_v11 }
 0x12d   : > { %629 = vperm.xlu1 %1166, %v496_v9   ;;  %619 = vperm.xlu0 %1165, %v496_v9  }
 0x131   : > { %1167 = vset.pattern.permute.xlu1 %v1267_v3  ;;  %1168 = vset.pattern.permute.xlu0 %v1268_v5 }
 0x132   : > { %640 = vperm.xlu1 %1167, %v497_v12  }
 0x136   : > { %1169 = vset.pattern.permute.xlu1 %v1274_v11 }
 0x191   : > { %v582_v13 = vpop.permute.xlu1 %581 }
 0x192   : > { %v584_v14 = vsel %vm556_vm3, %v582_v13, 0.0 }
 0x193   : > { %v1486_v15 = vmax.f32 %v579_v1, %v584_v14 }
 0x195   : > { %592 = vrot.lane.b32.xlu1 %v1486_v15, %s1275_s9  ;;  %v646_v56 = vrot.slane %v1486_v15, %v1450_v21  ;;  %v656_v60 = vrot.slane %v1486_v15, %v1453_v26  ;;  %v666_v7 = vrot.slane %v1486_v15, %v1505_v32 }
 0x196   : > { %v780_v16 = vpop.permute.xlu0 %779 }
 0x197   : > { %v782_v17 = vsel %vm763_vm4, %v780_v16, 0.0 }
 0x198   : > { %v1490_v18 = vmax.f32 %v777_v8, %v782_v17  ;;  %v676_v17 = vrot.slane %v1486_v15, %v1511_v40 }
 0x199   : > { %660 = vperm.xlu1 %1169, %v497_v12  }
 0x19a   : > { %785 = vrot.lane.b32.xlu0 %v1490_v18, %s1275_s9  ;;  %v816_v19 = vrot.slane %v1490_v18, %v1450_v21  ;;  %v822_v59 = vrot.slane %v1490_v18, %v1453_v26  ;;  %v828_v9 = vrot.slane %v1490_v18, %v1505_v32  ;;  %s462_s9 = scalar_lea.vmem [#allocation4], %s1092_s19  ;;  %s1181_s19 = scalar_lea.vmem %s1180_s1, 256 }
 0x19b   : > { %s934_s17 = sshll.u32 %s462_s9, 4  ;;  %s935_s17 = int_to_ptr.vmem [resolvable:$true] %s934_s17 }
 0x19c   : > { %s1175_s26 = scalar_lea.vmem %s935_s17, 128  ;;  %p1182_p0 = scmp.lt.s32.totalorder %s935_s17, %s1180_s1 }
 0x19d   : > { %1170 = vset.pattern.permute.xlu1 %v1273_v10  ;;  %p1176_p11 = scmp.ne.s32.totalorder %s935_s17, %s1175_s26  ;;  %p1183_p1 = scmp.lt.s32.totalorder %s1181_s19, %s1175_s26 }
 0x19e   : > { %650 = vperm.xlu0 %1168, %v497_v12   ;;  %670 = vperm.xlu1 %1170, %v497_v12   ;;  %v589_v22 = vpop.permute.xlu1 %588 }
 0x19f   : > { %p1177_p12 = pnand %p1176_p11, %p1393_p5  ;;  %p1184_p2 = por %p1183_p1, %p1182_p0 }
 0x1a1   : > { %p1178_p13 = pneg %p1177_p12 }
 0x1a2   : > { %1171 = vset.pattern.permute.xlu0 %v1267_v3  ;;  %1172 = vset.pattern.permute.xlu1 %v1268_v5 }
 0x1a3   : > { %686 = vperm.xlu0 %1171, %v498_v20   ;;  %696 = vperm.xlu1 %1172, %v498_v20   ;;  %v610_v23 = vpop.permute.xlu1 %609  ;;  %v600_v25 = vpop.permute.xlu0 %599  ;;  %p1185_p3 = pnand %p1184_p2, %p1178_p13 }
 0x1a7   : > { %679 = vrot.lane.b32.xlu0 %v1486_v15, %s1276_s22  ;;  %837 = vrot.lane.b32.xlu1 %v1490_v18, %s1276_s22 }
 0x1a8   : > { %1174 = vset.pattern.permute.xlu0 %v1273_v10  ;;  %1173 = vset.pattern.permute.xlu1 %v1274_v11  ;;  %v630_v24 = vpop.permute.xlu1 %629  ;;  %v620_v5 = vpop.permute.xlu0 %619 }
 0x1ab   : > { %716 = vperm.xlu0 %1174, %v498_v20   ;;  %706 = vperm.xlu1 %1173, %v498_v20   ;;  %v834_v20 = vrot.slane %v1490_v18, %v1511_v40 }
 0x1ad   : > { %v641_v3 = vpop.permute.xlu1 %640 }
 0x1ae   : > { %v817_v58 = vmul.f32 %v816_v19, %v641_v3  ;;  %v647_v62 = vmul.f32 %v646_v56, %v641_v3 }
 0x207   : > { %v593_v27 = vpop.permute.xlu1 %592 }
 0x208   : > { %v596_v28 = vsel %vm595_vm5, 0.0, %v593_v27 }
 0x209   : > { %v605_v29 = vrot.slane %v596_v28, %v1450_v21  ;;  %v615_v30 = vrot.slane %v596_v28, %v1453_v26  ;;  %v625_v36 = vrot.slane %v596_v28, %v1505_v32  ;;  %v635_v44 = vrot.slane %v596_v28, %v1511_v40 }
 0x20b   : > { %v606_v31 = vmul.f32 %v605_v29, %v600_v25  ;;  %v616_v34 = vmul.f32 %v615_v30, %v610_v23  ;;  %v626_v45 = vmul.f32 %v625_v36, %v620_v5  ;;  %v636_v53 = vmul.f32 %v635_v44, %v630_v24 }
 0x20c   : > { %v786_v33 = vpop.permute.xlu0 %785 }
 0x20d   : > { %v607_v35 = vadd.f32 %v606_v31, %v589_v22  ;;  %v788_v37 = vsel %vm595_vm5, 0.0, %v786_v33 }
 0x20e   : > { %v792_v38 = vrot.slane %v788_v37, %v1450_v21  ;;  %v798_v39 = vrot.slane %v788_v37, %v1453_v26  ;;  %v804_v43 = vrot.slane %v788_v37, %v1505_v32  ;;  %v810_v48 = vrot.slane %v788_v37, %v1511_v40 }
 0x20f   : > { %v617_v41 = vadd.f32 %v616_v34, %v607_v35 }
 0x210   : > { %v793_v42 = vmul.f32 %v792_v38, %v600_v25  ;;  %v799_v47 = vmul.f32 %v798_v39, %v610_v23  ;;  %v805_v51 = vmul.f32 %v804_v43, %v620_v5  ;;  %v811_v55 = vmul.f32 %v810_v48, %v630_v24 }
 0x211   : > { %v627_v49 = vadd.f32 %v626_v45, %v617_v41 }
 0x212   : > { %v794_v46 = vadd.f32 %v793_v42, %v589_v22 }
 0x213   : > { %v637_v57 = vadd.f32 %v636_v53, %v627_v49 }
 0x214   : > { %v800_v50 = vadd.f32 %v799_v47, %v794_v46  ;;  %v661_v52 = vpop.permute.xlu1 %660 }
 0x215   : > { %v648_v6 = vadd.f32 %v647_v62, %v637_v57  ;;  %v667_v13 = vmul.f32 %v666_v7, %v661_v52  ;;  %v829_v14 = vmul.f32 %v828_v9, %v661_v52 }
 0x216   : > { %v806_v54 = vadd.f32 %v805_v51, %v800_v50 }
 0x218   : > { %v812_v61 = vadd.f32 %v811_v55, %v806_v54 }
 0x219   : > { %v651_v63 = vpop.permute.xlu0 %650  ;;  %v671_v0 = vpop.permute.xlu1 %670 }
 0x21a   : > { %v657_v1 = vmul.f32 %v656_v60, %v651_v63  ;;  %v818_v2 = vadd.f32 %v817_v58, %v812_v61  ;;  %v823_v4 = vmul.f32 %v822_v59, %v651_v63  ;;  %v677_v25 = vmul.f32 %v676_v17, %v671_v0  ;;  %v872_v58 = vld [vmem:[%s1627_s6] sm:$0xff] }
 0x21b   : > { %v835_v3 = vmul.f32 %v834_v20, %v671_v0 }
 0x21c   : > { %v658_v8 = vadd.f32 %v657_v1, %v648_v6  ;;  %v824_v10 = vadd.f32 %v823_v4, %v818_v2 }
 0x21e   : > { %v687_v11 = vpop.permute.xlu0 %686  ;;  %v697_v12 = vpop.permute.xlu1 %696  ;;  %v668_v16 = vadd.f32 %v667_v13, %v658_v8  ;;  %v830_v22 = vadd.f32 %v829_v14, %v824_v10 }
 0x220   : > { %v678_v31 = vadd.f32 %v677_v25, %v668_v16  ;;  %v836_v33 = vadd.f32 %v835_v3, %v830_v22 }
 0x222   : > { %v680_v23 = vpop.permute.xlu0 %679  ;;  %v838_v24 = vpop.permute.xlu1 %837 }
 0x223   : > { %v683_v5 = vsel %vm682_vm6, %v680_v23, 0.0  ;;  %v841_v27 = vsel %vm840_vm7, %v838_v24, 0.0 }
 0x224   : > { %v692_v28 = vrot.slane %v683_v5, %v1450_v21  ;;  %v702_v29 = vrot.slane %v683_v5, %v1453_v26  ;;  %v845_v30 = vrot.slane %v841_v27, %v1450_v21  ;;  %v851_v15 = vrot.slane %v841_v27, %v1453_v26 }
 0x225   : > { %v857_v35 = vrot.slane %v841_v27, %v1505_v32  ;;  %v863_v36 = vrot.slane %v841_v27, %v1511_v40  ;;  %v712_v37 = vrot.slane %v683_v5, %v1505_v32  ;;  %v722_v46 = vrot.slane %v683_v5, %v1511_v40  ;;  %v884_v40 = vld [vmem:[%s1628_s7] sm:$0xff] }
 0x226   : > { %v693_v18 = vmul.f32 %v692_v28, %v687_v11  ;;  %v846_v34 = vmul.f32 %v845_v30, %v687_v11  ;;  %v707_v38 = vpop.permute.xlu1 %706  ;;  %v703_v39 = vmul.f32 %v702_v29, %v697_v12  ;;  %v852_v41 = vmul.f32 %v851_v15, %v697_v12  ;;  %v717_v44 = vpop.permute.xlu0 %716 }
 0x227   : > { %v858_v26 = vmul.f32 %v857_v35, %v707_v38  ;;  %v864_v47 = vmul.f32 %v863_v36, %v717_v44  ;;  %v713_v48 = vmul.f32 %v712_v37, %v707_v38  ;;  %v723_v52 = vmul.f32 %v722_v46, %v717_v44 }
 0x228   : > { %v694_v42 = vadd.f32 %v693_v18, %v678_v31  ;;  %v847_v43 = vadd.f32 %v846_v34, %v836_v33 }
 0x22a   : > { %v704_v21 = vadd.f32 %v703_v39, %v694_v42  ;;  %v853_v45 = vadd.f32 %v852_v41, %v847_v43 }
 0x22c   : > { %v859_v49 = vadd.f32 %v858_v26, %v853_v45  ;;  %v714_v50 = vadd.f32 %v713_v48, %v704_v21 }
 0x22e   : > { %v865_v51 = vadd.f32 %v864_v47, %v859_v49  ;;  %v724_v32 = vadd.f32 %v723_v52, %v714_v50 }
 0x230   : > { %867 = vrot.lane.b32.xlu1 %v865_v51, %s1276_s22 }
 0x234   : > { %726 = vrot.lane.b32.xlu1 %v724_v32, %s1276_s22 }
 0x2a2   : > { %v868_v53 = vpop.permute.xlu1 %867 }
 0x2a3   : > { %v870_v19 = vsel %vm840_vm7, %v868_v53, 0.0 }
 0x2a4   : > { %v871_v54 = vmax.f32 %v865_v51, %v870_v19 }
 0x2a6   : > { %v727_v55 = vpop.permute.xlu1 %726  ;;  %v885_v56 = vmul.f32 %v884_v40, %v871_v54  ;;  %902 = vst.msk [vmem:[%s1552_s25] sm:$0xff] %vm490_vm1, %v871_v54 }
 0x2a7   : > { %v729_v57 = vsel %vm682_vm6, %v727_v55, 0.0 }
 0x2a8   : > { %v730_v59 = vmax.f32 %v724_v32, %v729_v57  ;;  %v886_v60 = vsel %vm490_vm1, %v885_v56, 0.0 }
 0x2a9   : > { %887 = vadd.xlane.f32.xlu1 %v886_v60 }
 0x2aa   : > { %v873_v61 = vmul.f32 %v872_v58, %v730_v59  ;;  %901 = vst [vmem:[%s462_s9] sm:$0xff] %v730_v59 }
 0x2ac   : > { %874 = vadd.xlane.f32.xlu0 %v873_v61 }
 0x2ad   : > { %1188 = shalt.err (!%p1185_p3)
}
 0x2ae   : > { %s1189_s9 = scalar_lea.hbm %s932_s23, 128  ;;  %s1193_s18 = scalar_lea.hbm %s1632_s12, 256 }
 0x2af   : > { %p1190_p4 = scmp.ne.s32.totalorder %s932_s23, %s1189_s9  ;;  %p1194_p9 = scmp.lt.s32.totalorder %s932_s23, %s1632_s12 }
 0x2b0   : > { %p1195_p10 = scmp.lt.s32.totalorder %s1193_s18, %s1189_s9 }
 0x2b1   : > { %p1191_p7 = pnand %p1190_p4, %p1393_p5 }
 0x2b2   : > { %p1196_p11 = por %p1195_p10, %p1194_p9 }
 0x2b3   : > { %p1192_p8 = pneg %p1191_p7 }
 0x2b5   : > { %p1197_p12 = pnand %p1196_p11, %p1192_p8 }
 0x2b7   : > { %1200 = shalt.err (!%p1197_p12)
}
 0x2b8   : > { %1102 = dma.vmem_to_hbm [thread:$0]  (%p1393_p5), %s935_s17, 128, %s932_s23, %s910_s0  }
 0x2b9   : > { %s1649_s1 = sshll.u32 %s1376_s8, 7  ;;  %s947_s22 = sshll.u32 %s1552_s25, 4  ;;  %s948_s22 = int_to_ptr.vmem [resolvable:$true] %s947_s22 }
 0x2ba   : > { %s945_s19 = scalar_lea.hbm %s1633_s13, %s1649_s1  ;;  %s915_s2 = scalar_lea.sflag [#allocation7], %s1545_s3 }
 0x2bb   : > { %s1201_s4 = scalar_lea.vmem %s948_s22, 128  ;;  %s1278_s18 = smov [#allocation6]  }
 0x2bc   : > { %p1202_p13 = scmp.ne.s32.totalorder %s948_s22, %s1201_s4  ;;  %s1205_s9 = sshll.u32 %s1278_s18, 4  ;;  %s1206_s9 = int_to_ptr.vmem [resolvable:$false] %s1205_s9 }
 0x2bd   : > { %s1207_s27 = scalar_lea.vmem %s1206_s9, 256  ;;  %p1208_p2 = scmp.lt.s32.totalorder %s948_s22, %s1206_s9 }
 0x2be   : > { %p1203_p0 = pnand %p1202_p13, %p1393_p5  ;;  %p1209_p3 = scmp.lt.s32.totalorder %s1207_s27, %s1201_s4 }
 0x2c0   : > { %p1204_p1 = pneg %p1203_p0  ;;  %p1210_p4 = por %p1209_p3, %p1208_p2 }
 0x2c2   : > { %p1211_p7 = pnand %p1210_p4, %p1204_p1 }
 0x2c4   : > { %1214 = shalt.err (!%p1211_p7)
}
 0x2c5   : > { %s1215_s0 = scalar_lea.hbm %s945_s19, 128  ;;  %s1219_s25 = scalar_lea.hbm %s1633_s13, 256 }
 0x2c6   : > { %p1216_p8 = scmp.ne.s32.totalorder %s945_s19, %s1215_s0  ;;  %p1220_p11 = scmp.lt.s32.totalorder %s945_s19, %s1633_s13 }
 0x2c7   : > { %p1221_p12 = scmp.lt.s32.totalorder %s1219_s25, %s1215_s0 }
 0x2c8   : > { %p1217_p9 = pnand %p1216_p8, %p1393_p5 }
 0x2c9   : > { %p1222_p13 = por %p1221_p12, %p1220_p11 }
 0x2ca   : > { %p1218_p10 = pneg %p1217_p9 }
 0x2cc   : > { %p1223_p0 = pnand %p1222_p13, %p1218_p10 }
 0x2ce   : > { %1226 = shalt.err (!%p1223_p0)
}
 0x2cf   : > { %1103 = dma.vmem_to_hbm [thread:$0]  (%p1393_p5), %s948_s22, 128, %s945_s19, %s915_s2   ;;  %v895_v13 = vld [vmem:[#allocation3] sm:$0x1]  ;;  %v882_v14 = vld [vmem:[#allocation2] sm:$0x1] }
 0x2d0   : > { %s483_s26 = scalar_lea.vmem %s1631_s11, %s1410_s24 }
 0x332   : > { %v888_v62 = vpop.xlane.xlu1 %887 }
 0x333   : > { %v889_v63 = vrot.slane %v888_v62, 4 }
 0x335   : > { %v890_v0 = vadd.f32 %v889_v63, %v888_v62  ;;  %v875_v1 = vpop.xlane.xlu0 %874 }
 0x336   : > { %v876_v2 = vrot.slane %v875_v1, 4 }
 0x337   : > { %v891_v4 = vrot.slane %v890_v0, 2 }
 0x338   : > { %v877_v6 = vadd.f32 %v876_v2, %v875_v1 }
 0x339   : > { %v892_v7 = vadd.f32 %v891_v4, %v890_v0 }
 0x33a   : > { %v878_v8 = vrot.slane %v877_v6, 2 }
 0x33b   : > { %v893_v9 = vrot.slane %v892_v7, 1 }
 0x33c   : > { %v879_v10 = vadd.f32 %v878_v8, %v877_v6 }
 0x33d   : > { %v894_v11 = vadd.f32 %v893_v9, %v892_v7 }
 0x33e   : > { %v880_v12 = vrot.slane %v879_v10, 1 }
 0x33f   : > { %v896_v17 = vadd.f32 %v895_v13, %v894_v11 }
 0x340   : > { %v881_v16 = vadd.f32 %v880_v12, %v879_v10 }
 0x342   : > { %v883_v20 = vadd.f32 %v882_v14, %v881_v16 }
 0x344   : > { %v897_v22 = vmul.f32 %v896_v17, %v883_v20 }
 0x346   : > { %899 = vst.msk [vmem:[%s483_s26] sm:$0x1] %vm898_vm0, %v897_v22 }
 0x347 PF: > { %p1113_p5 = scmp.ge.s32.totalorder %s1265_s15, 2  ;;  %s971_s28 = sand.u32 1, %s1253_s29  }
 0x348   : > { %s972_s19 = scalar_lea.sflag [#allocation5], %s971_s28 }
 0x349   : > { %p1107_p1 = pnand %p1113_p5, %p1397_p6 }
 0x34b   : > { %p1108_p2 = pneg %p1107_p1 }
 0x34d   : > { %1244 = dma.done.wait (%p1108_p2), %s972_s19, 128  }
 0x34e   : > { %1246 = vsyncadd (%p1108_p2), %s972_s19, 4294967168  ;;  %s981_s22 = scalar_lea.sflag [#allocation7], %s971_s28 }
 0x34f   : > { %1248 = dma.done.wait (%p1108_p2), %s981_s22, 128  }
 0x350   : > { %1250 = vsyncadd (%p1108_p2), %s981_s22, 4294967168  ;;  %s1650_s24 = sld [smem:[#allocation10_spill]]  ;;  %p31_p3 = scmp.ge.s32.totalorder %s1380_s16, 4  }
 0x351   : > { %s1651_s29 = smov %s1257_s30  ;;  %s1652_s30 = smov %s1261_s14 }
 0x352   : > { %s1654_s15 = smov %s1380_s16  ;;  %33 = sbr.rel (!%p31_p3) target bundleno = 11 (0xb), region = 139 }
 0x356   : > { %s1653_s14 = smov %s1650_s24 }
 0x357   :  { %986 = vsyncpa [#allocation5], 1 }
 0x358   :  { %988 = vsyncpa [#allocation5 + $0x1], 1 }
 0x359   :  { %989 = vsyncpa [#allocation7], 1 }
 0x35a   :  { %991 = vsyncpa [#allocation7 + $0x1], 1 }

</bundles_post_ra>
